<compile_context>
chip_gen: v7x
topology: tpu7x:2x2x1
jax: 0.10.0
libtpu: 0.0.40
codegen_flags: <defaults>
</compile_context>

<pallas_src>
import jax
import jax.numpy as jnp
from jax.experimental import pallas as pl
from jax.experimental.pallas import tpu as pltpu

# ---------------- problem sizes (small, consistent with the module) ----------
B = 8                     # batch
NUM_SPARSE = 4            # number of sparse feature columns
SPARSE_VOCAB = 100
SPARSE_EMBED = 32         # embed_dim per sparse feature
SEQ_VOCAB = 1000
SEQ_EMBED = 128           # sequence feature embed_dim
SEQ_LEN = 8
SPARSE_DIMS = NUM_SPARSE * SPARSE_EMBED              # 128
INPUT_DIMS = SPARSE_DIMS + SEQ_EMBED                 # 256
STAR_OUT = 256            # star_output_dim (module default is 1024; small here)
NUM_SLOTS = 4
MLP_HIDDEN = (512, 256, 128)
AUX_H1 = MLP_HIDDEN[0]                               # 512
STACK_N = AUX_H1 + NUM_SLOTS * STAR_OUT              # 1536 (lane-dense)
OUT_LANES = 128                                      # lane-dense output slab


# ---------------- fused forward kernel ---------------------------------------
def star_kernel(sparse_ref, seq_ref, sid_ref,
                wstk_ref, wstk_s_ref, bstk_ref,               # fused first matmul
                aw2_ref, aw2_s_ref, ab2_ref,                  # aux tower tail
                aw3_ref, aw3_s_ref, ab3_ref,
                mw1_ref, mw1_s_ref, mb1_ref,                  # main tower
                mw2_ref, mw2_s_ref, mb2_ref,
                mw3_ref, mw3_s_ref, mb3_ref,
                w4a_ref, w4m_ref, b4_ref,                     # fused final projections
                out_ref):
    f32 = jnp.float32
    bf16 = jnp.bfloat16

    def qdot(x_bf, wq_ref, s_ref, b_ref):
        # Weight-only int8: dequant to bf16 (storage/DMA format only, the MXU
        # always sees bf16); per-output-channel scale applied to the f32 acc.
        w = wq_ref[...].astype(bf16)
        return (jnp.dot(x_bf, w, preferred_element_type=f32) * s_ref[...]
                + b_ref[...])

    # Mean-pool (exact power-of-two scale) and lane-aligned concat; one K=256
    # dot producing aux layer-1 pre-activations AND all 4 slot outputs.
    pool = jnp.sum(seq_ref[...], axis=1) * (1.0 / SEQ_LEN)          # (B, 128) f32
    x = jnp.concatenate([sparse_ref[...], pool], axis=-1).astype(bf16)  # (B, 256)

    y = qdot(x, wstk_ref, wstk_s_ref, bstk_ref)                     # (B, 1536) f32

    # ---- auxiliary tower ----------------------------------------------------
    h = jnp.maximum(y[:, :AUX_H1], 0.0).astype(bf16)
    h = jnp.maximum(qdot(h, aw2_ref, aw2_s_ref, ab2_ref), 0.0).astype(bf16)
    h_aux = jnp.maximum(qdot(h, aw3_ref, aw3_s_ref, ab3_ref), 0.0)  # (B, 128) f32

    # ---- scenario selection (masked sum over lane-aligned slot blocks) ------
    # Matches the torch.where chain: rows with scenario_id outside [0, 4) stay 0.
    sid = sid_ref[...]                                              # (B, 1) int32
    slot = (sid == 0).astype(f32) * y[:, AUX_H1:AUX_H1 + STAR_OUT]
    for s in range(1, NUM_SLOTS):                                   # unrolled, parallel
        lo = AUX_H1 + s * STAR_OUT
        slot = slot + (sid == s).astype(f32) * y[:, lo:lo + STAR_OUT]

    # ---- main tower -----------------------------------------------------------
    h = jnp.maximum(qdot(slot.astype(bf16), mw1_ref, mw1_s_ref, mb1_ref),
                    0.0).astype(bf16)
    h = jnp.maximum(qdot(h, mw2_ref, mw2_s_ref, mb2_ref), 0.0).astype(bf16)
    h_main = jnp.maximum(qdot(h, mw3_ref, mw3_s_ref, mb3_ref), 0.0)  # (B, 128) f32

    # ---- fused final N=1 projections: VPU multiply + lane reduce -------------
    logit = (jnp.sum(h_aux * w4a_ref[...], axis=-1, keepdims=True)
             + jnp.sum(h_main * w4m_ref[...], axis=-1, keepdims=True)
             + b4_ref[...])                                         # (B, 1)

    ctr = jax.nn.sigmoid(logit)
    # Lane-dense output slab; the wrapper slices column 0.
    out_ref[...] = jnp.broadcast_to(ctr, out_ref.shape)


def star_forward(sparse_embed, seq_embed, scenario_id, kparams):
    args = (sparse_embed, seq_embed, scenario_id) + tuple(kparams)
    vmem = lambda: pl.BlockSpec(memory_space=pltpu.MemorySpace.VMEM)
    out = pl.pallas_call(
        star_kernel,
        out_shape=jax.ShapeDtypeStruct((sparse_embed.shape[0], OUT_LANES), jnp.float32),
        in_specs=[vmem() for _ in args],
        out_specs=vmem(),
        # Footprint is ~1 MB int8 weights + tiny activations: 8 MiB is safe on
        # every generation (incl. v7x's 64 MiB physical VMEM) with headroom.
        compiler_params=pltpu.CompilerParams(vmem_limit_bytes=8 * 1024 * 1024),
    )(*args)
    ctr = out[:, :1]
    return ctr, ctr  # module returns (ctr, ctr)


# ---------------- deterministic parameter construction ------------------------
def xavier(key, shape):
    fan_in, fan_out = shape[-2], shape[-1]
    limit = (6.0 / (fan_in + fan_out)) ** 0.5
    return jax.random.uniform(key, shape, jnp.float32, -limit, limit)


def make_mlp_params(key, in_dim):
    dims = (in_dim,) + MLP_HIDDEN + (1,)
    keys = jax.random.split(key, 4)
    out = []
    for i in range(4):
        out.append(xavier(keys[i], (dims[i], dims[i + 1])))
        out.append(jnp.zeros((1, dims[i + 1]), jnp.float32))
    return tuple(out)


def make_params(key):
    """Module-style parameters (f32), mirroring the PyTorch layout."""
    k_aux, k_sh, k_sl, k_main = jax.random.split(key, 4)
    aux = make_mlp_params(k_aux, INPUT_DIMS)
    shared_w = xavier(k_sh, (INPUT_DIMS, STAR_OUT))
    shared_b = jnp.zeros((1, STAR_OUT), jnp.float32)
    slot_keys = jax.random.split(k_sl, NUM_SLOTS)
    slot_w = jnp.stack([xavier(slot_keys[i], (INPUT_DIMS, STAR_OUT))
                        for i in range(NUM_SLOTS)])
    slot_b = jnp.zeros((NUM_SLOTS, 1, STAR_OUT), jnp.float32)
    main = make_mlp_params(k_main, STAR_OUT)
    return aux + (shared_w, shared_b, slot_w, slot_b) + main


def quantize_per_col(w):
    """Weight-only int8 with per-output-channel f32 scales."""
    scale = jnp.max(jnp.abs(w), axis=0, keepdims=True) / 127.0      # (1, N)
    scale = jnp.maximum(scale, 1e-12)
    q = jnp.clip(jnp.round(w / scale), -127.0, 127.0).astype(jnp.int8)
    return q, scale.astype(jnp.float32)


def prepare_kernel_params(params):
    """Constant-fold / stack / quantize module params into kernel arguments."""
    (aw1, ab1, aw2, ab2, aw3, ab3, aw4, ab4,
     shw, shb, slw, slb,
     mw1, mb1, mw2, mb2, mw3, mb3, mw4, mb4) = params

    # Effective STAR weights and biases (pure weight constant folding).
    w_eff = slw * shw[None]                                  # (4, 256, 256)
    b_eff = slb + shb[None]                                  # (4, 1, 256)

    # Stack aux layer-1 with all slot projections -> one (256, 1536) RHS for a
    # single K=256 MXU pass (v6e/v7x systolic depth; v5e splits it internally).
    w_stack = jnp.concatenate([aw1] + [w_eff[s] for s in range(NUM_SLOTS)], axis=1)
    b_stack = jnp.concatenate([ab1] + [b_eff[s] for s in range(NUM_SLOTS)], axis=1)

    out = []
    for w, b in ((w_stack, b_stack), (aw2, ab2), (aw3, ab3),
                 (mw1, mb1), (mw2, mb2), (mw3, mb3)):
        q, s = quantize_per_col(w)
        out.extend([q, s, b])

    out.extend([jnp.reshape(aw4, (1, MLP_HIDDEN[2])),        # (1, 128) f32
                jnp.reshape(mw4, (1, MLP_HIDDEN[2])),        # (1, 128) f32
                ab4 + mb4])                                  # (1, 1)  f32
    return tuple(out)


# ---------------- pure-JAX reference (for a sanity check) ---------------------
def reference(sparse_embed, seq_embed, scenario_id, params):
    (aw1, ab1, aw2, ab2, aw3, ab3, aw4, ab4,
     shw, shb, slw, slb,
     mw1, mb1, mw2, mb2, mw3, mb3, mw4, mb4) = params
    hp = jax.lax.Precision.HIGHEST

    def mlp(h, w1, b1, w2, b2, w3, b3, w4, b4):
        h = jnp.maximum(jnp.dot(h, w1, precision=hp) + b1, 0.0)
        h = jnp.maximum(jnp.dot(h, w2, precision=hp) + b2, 0.0)
        h = jnp.maximum(jnp.dot(h, w3, precision=hp) + b3, 0.0)
        return jnp.dot(h, w4, precision=hp) + b4

    pool = jnp.mean(seq_embed, axis=1)
    x = jnp.concatenate([sparse_embed, pool], axis=-1)
    sa = mlp(x, aw1, ab1, aw2, ab2, aw3, ab3, aw4, ab4)
    out = jnp.zeros((x.shape[0], STAR_OUT), jnp.float32)
    for s in range(NUM_SLOTS):
        slot_out = jnp.dot(x, slw[s] * shw, precision=hp) + slb[s] + shb
        out = jnp.where(scenario_id == s, slot_out, out)
    main = mlp(out, mw1, mb1, mw2, mb2, mw3, mb3, mw4, mb4)
    ctr = jax.nn.sigmoid(sa + main)
    return ctr, ctr


# ---------------- driver -------------------------------------------------------
if __name__ == "__main__":
    root = jax.random.PRNGKey(0)
    k_params, k_emb, k_seq_emb, k_in1, k_in2, k_in3 = jax.random.split(root, 6)

    # parameters (module-style f32) and kernel-side prepared/quantized params
    params = make_params(k_params)
    kparams = prepare_kernel_params(params)

    # embedding tables (glue; data-dependent gathers stay outside the kernel)
    emb_keys = jax.random.split(k_emb, NUM_SPARSE)
    sparse_tables = [0.05 * jax.random.normal(emb_keys[i], (SPARSE_VOCAB, SPARSE_EMBED),
                                              jnp.float32) for i in range(NUM_SPARSE)]
    seq_table = 0.05 * jax.random.normal(k_seq_emb, (SEQ_VOCAB, SEQ_EMBED), jnp.float32)

    # raw module inputs
    sparse_inputs = jax.random.randint(k_in1, (B, NUM_SPARSE), 0, SPARSE_VOCAB, jnp.int32)
    sequence_inputs = jax.random.randint(k_in2, (B, SEQ_LEN), 0, SEQ_VOCAB, jnp.int32)
    scenario_id = jax.random.randint(k_in3, (B, 1), 0, 4, jnp.int32)

    # embedding lookups + concat (JAX glue, mirrors torch.cat of nn.Embedding outputs)
    sparse_embed = jnp.concatenate(
        [sparse_tables[i][sparse_inputs[:, i]] for i in range(NUM_SPARSE)], axis=-1)
    seq_embed = seq_table[sequence_inputs]            # (B, SEQ_LEN, SEQ_EMBED)

    fwd = jax.jit(star_forward)
    ctr, ctr2 = fwd(sparse_embed, seq_embed, scenario_id, kparams)
    jax.block_until_ready(ctr)

    ref_ctr, _ = reference(sparse_embed, seq_embed, scenario_id, params)
    assert ctr.shape == (B, 1) and ctr2.shape == (B, 1)
    assert jnp.allclose(ctr, ref_ctr, atol=2e-2, rtol=0), "mismatch vs JAX reference"

    print("KERNEL_OK")
</pallas_src>

<mosaic_0001>
module attributes {stable_mosaic.version = 11 : i64} {
  func.func @star_kernel(%arg0: memref<8x128xf32, #tpu.memory_space<vmem>>, %arg1: memref<8x8x128xf32, #tpu.memory_space<vmem>>, %arg2: memref<8x1xi32, #tpu.memory_space<vmem>>, %arg3: memref<256x1536xi8, #tpu.memory_space<vmem>>, %arg4: memref<1x1536xf32, #tpu.memory_space<vmem>>, %arg5: memref<1x1536xf32, #tpu.memory_space<vmem>>, %arg6: memref<512x256xi8, #tpu.memory_space<vmem>>, %arg7: memref<1x256xf32, #tpu.memory_space<vmem>>, %arg8: memref<1x256xf32, #tpu.memory_space<vmem>>, %arg9: memref<256x128xi8, #tpu.memory_space<vmem>>, %arg10: memref<1x128xf32, #tpu.memory_space<vmem>>, %arg11: memref<1x128xf32, #tpu.memory_space<vmem>>, %arg12: memref<256x512xi8, #tpu.memory_space<vmem>>, %arg13: memref<1x512xf32, #tpu.memory_space<vmem>>, %arg14: memref<1x512xf32, #tpu.memory_space<vmem>>, %arg15: memref<512x256xi8, #tpu.memory_space<vmem>>, %arg16: memref<1x256xf32, #tpu.memory_space<vmem>>, %arg17: memref<1x256xf32, #tpu.memory_space<vmem>>, %arg18: memref<256x128xi8, #tpu.memory_space<vmem>>, %arg19: memref<1x128xf32, #tpu.memory_space<vmem>>, %arg20: memref<1x128xf32, #tpu.memory_space<vmem>>, %arg21: memref<1x128xf32, #tpu.memory_space<vmem>>, %arg22: memref<1x128xf32, #tpu.memory_space<vmem>>, %arg23: memref<1x1xf32, #tpu.memory_space<vmem>>, %arg24: memref<8x128xf32, #tpu.memory_space<vmem>>) attributes {dimension_semantics = [], scalar_prefetch = 0 : i64, scratch_operands = 0 : i64, tpu.core_type = #tpu.core_type<tc>} {
    %c0 = arith.constant 0 : index
    %c0_0 = arith.constant 0 : index
    %c0_1 = arith.constant 0 : index
    %0 = vector.load %arg1[%c0, %c0_0, %c0_1] : memref<8x8x128xf32, #tpu.memory_space<vmem>>, vector<8x8x128xf32>
    %cst = arith.constant dense<0.000000e+00> : vector<8x128xf32>
    %1 = vector.multi_reduction <add>, %0, %cst [1] : vector<8x8x128xf32> to vector<8x128xf32>
    %cst_2 = arith.constant 1.250000e-01 : f32
    %2 = vector.broadcast %cst_2 : f32 to vector<8x128xf32>
    %3 = arith.mulf %1, %2 : vector<8x128xf32>
    %c0_3 = arith.constant 0 : index
    %c0_4 = arith.constant 0 : index
    %4 = vector.load %arg0[%c0_3, %c0_4] : memref<8x128xf32, #tpu.memory_space<vmem>>, vector<8x128xf32>
    %5 = tpu.concatenate %4, %3 in 1 : vector<8x128xf32>, vector<8x128xf32> -> vector<8x256xf32>
    %6 = arith.truncf %5 : vector<8x256xf32> to vector<8x256xbf16>
    %c0_5 = arith.constant 0 : index
    %c0_6 = arith.constant 0 : index
    %7 = vector.load %arg3[%c0_5, %c0_6] : memref<256x1536xi8, #tpu.memory_space<vmem>>, vector<256x1536xi8>
    %8 = arith.sitofp %7 : vector<256x1536xi8> to vector<256x1536xbf16>
    %cst_7 = arith.constant dense<0.000000e+00> : vector<8x1536xf32>
    %9 = tpu.matmul %6, %8, %cst_7 {dimension_numbers = #tpu.dot_dimension_numbers<[1], [0], [0], [1], [0, 0, 1, 1], [], []>} : vector<8x256xbf16>, vector<256x1536xbf16>, vector<8x1536xf32> -> vector<8x1536xf32>
    %c0_8 = arith.constant 0 : index
    %c0_9 = arith.constant 0 : index
    %10 = vector.load %arg4[%c0_8, %c0_9] : memref<1x1536xf32, #tpu.memory_space<vmem>>, vector<1x1536xf32>
    %11 = vector.broadcast %10 : vector<1x1536xf32> to vector<8x1536xf32>
    %12 = arith.mulf %9, %11 : vector<8x1536xf32>
    %c0_10 = arith.constant 0 : index
    %c0_11 = arith.constant 0 : index
    %13 = vector.load %arg5[%c0_10, %c0_11] : memref<1x1536xf32, #tpu.memory_space<vmem>>, vector<1x1536xf32>
    %14 = vector.broadcast %13 : vector<1x1536xf32> to vector<8x1536xf32>
    %15 = arith.addf %12, %14 : vector<8x1536xf32>
    %16 = vector.extract_strided_slice %15 {offsets = [0, 0], sizes = [8, 512], strides = [1, 1]} : vector<8x1536xf32> to vector<8x512xf32>
    %cst_12 = arith.constant 0.000000e+00 : f32
    %17 = vector.broadcast %cst_12 : f32 to vector<8x512xf32>
    %18 = arith.maximumf %16, %17 : vector<8x512xf32>
    %19 = arith.truncf %18 : vector<8x512xf32> to vector<8x512xbf16>
    %c0_13 = arith.constant 0 : index
    %c0_14 = arith.constant 0 : index
    %20 = vector.load %arg6[%c0_13, %c0_14] : memref<512x256xi8, #tpu.memory_space<vmem>>, vector<512x256xi8>
    %21 = arith.sitofp %20 : vector<512x256xi8> to vector<512x256xbf16>
    %cst_15 = arith.constant dense<0.000000e+00> : vector<8x256xf32>
    %22 = tpu.matmul %19, %21, %cst_15 {dimension_numbers = #tpu.dot_dimension_numbers<[1], [0], [0], [1], [0, 0, 1, 1], [], []>} : vector<8x512xbf16>, vector<512x256xbf16>, vector<8x256xf32> -> vector<8x256xf32>
    %c0_16 = arith.constant 0 : index
    %c0_17 = arith.constant 0 : index
    %23 = vector.load %arg7[%c0_16, %c0_17] : memref<1x256xf32, #tpu.memory_space<vmem>>, vector<1x256xf32>
    %24 = vector.broadcast %23 : vector<1x256xf32> to vector<8x256xf32>
    %25 = arith.mulf %22, %24 : vector<8x256xf32>
    %c0_18 = arith.constant 0 : index
    %c0_19 = arith.constant 0 : index
    %26 = vector.load %arg8[%c0_18, %c0_19] : memref<1x256xf32, #tpu.memory_space<vmem>>, vector<1x256xf32>
    %27 = vector.broadcast %26 : vector<1x256xf32> to vector<8x256xf32>
    %28 = arith.addf %25, %27 : vector<8x256xf32>
    %cst_20 = arith.constant 0.000000e+00 : f32
    %29 = vector.broadcast %cst_20 : f32 to vector<8x256xf32>
    %30 = arith.maximumf %28, %29 : vector<8x256xf32>
    %31 = arith.truncf %30 : vector<8x256xf32> to vector<8x256xbf16>
    %c0_21 = arith.constant 0 : index
    %c0_22 = arith.constant 0 : index
    %32 = vector.load %arg9[%c0_21, %c0_22] : memref<256x128xi8, #tpu.memory_space<vmem>>, vector<256x128xi8>
    %33 = arith.sitofp %32 : vector<256x128xi8> to vector<256x128xbf16>
    %cst_23 = arith.constant dense<0.000000e+00> : vector<8x128xf32>
    %34 = tpu.matmul %31, %33, %cst_23 {dimension_numbers = #tpu.dot_dimension_numbers<[1], [0], [0], [1], [0, 0, 1, 1], [], []>} : vector<8x256xbf16>, vector<256x128xbf16>, vector<8x128xf32> -> vector<8x128xf32>
    %c0_24 = arith.constant 0 : index
    %c0_25 = arith.constant 0 : index
    %35 = vector.load %arg10[%c0_24, %c0_25] : memref<1x128xf32, #tpu.memory_space<vmem>>, vector<1x128xf32>
    %36 = vector.broadcast %35 : vector<1x128xf32> to vector<8x128xf32>
    %37 = arith.mulf %34, %36 : vector<8x128xf32>
    %c0_26 = arith.constant 0 : index
    %c0_27 = arith.constant 0 : index
    %38 = vector.load %arg11[%c0_26, %c0_27] : memref<1x128xf32, #tpu.memory_space<vmem>>, vector<1x128xf32>
    %39 = vector.broadcast %38 : vector<1x128xf32> to vector<8x128xf32>
    %40 = arith.addf %37, %39 : vector<8x128xf32>
    %cst_28 = arith.constant 0.000000e+00 : f32
    %41 = vector.broadcast %cst_28 : f32 to vector<8x128xf32>
    %42 = arith.maximumf %40, %41 : vector<8x128xf32>
    %c0_29 = arith.constant 0 : index
    %c0_30 = arith.constant 0 : index
    %43 = vector.load %arg2[%c0_29, %c0_30] : memref<8x1xi32, #tpu.memory_space<vmem>>, vector<8x1xi32>
    %c0_i32 = arith.constant 0 : i32
    %44 = vector.broadcast %c0_i32 : i32 to vector<8x1xi32>
    %45 = arith.cmpi eq, %43, %44 : vector<8x1xi32>
    %46 = arith.extui %45 : vector<8x1xi1> to vector<8x1xi32>
    %47 = arith.sitofp %46 : vector<8x1xi32> to vector<8x1xf32>
    %48 = vector.extract_strided_slice %15 {offsets = [0, 512], sizes = [8, 256], strides = [1, 1]} : vector<8x1536xf32> to vector<8x256xf32>
    %49 = vector.broadcast %47 : vector<8x1xf32> to vector<8x256xf32>
    %50 = arith.mulf %49, %48 : vector<8x256xf32>
    %c1_i32 = arith.constant 1 : i32
    %51 = vector.broadcast %c1_i32 : i32 to vector<8x1xi32>
    %52 = arith.cmpi eq, %43, %51 : vector<8x1xi32>
    %53 = arith.extui %52 : vector<8x1xi1> to vector<8x1xi32>
    %54 = arith.sitofp %53 : vector<8x1xi32> to vector<8x1xf32>
    %55 = vector.extract_strided_slice %15 {offsets = [0, 768], sizes = [8, 256], strides = [1, 1]} : vector<8x1536xf32> to vector<8x256xf32>
    %56 = vector.broadcast %54 : vector<8x1xf32> to vector<8x256xf32>
    %57 = arith.mulf %56, %55 : vector<8x256xf32>
    %58 = arith.addf %50, %57 : vector<8x256xf32>
    %c2_i32 = arith.constant 2 : i32
    %59 = vector.broadcast %c2_i32 : i32 to vector<8x1xi32>
    %60 = arith.cmpi eq, %43, %59 : vector<8x1xi32>
    %61 = arith.extui %60 : vector<8x1xi1> to vector<8x1xi32>
    %62 = arith.sitofp %61 : vector<8x1xi32> to vector<8x1xf32>
    %63 = vector.extract_strided_slice %15 {offsets = [0, 1024], sizes = [8, 256], strides = [1, 1]} : vector<8x1536xf32> to vector<8x256xf32>
    %64 = vector.broadcast %62 : vector<8x1xf32> to vector<8x256xf32>
    %65 = arith.mulf %64, %63 : vector<8x256xf32>
    %66 = arith.addf %58, %65 : vector<8x256xf32>
    %c3_i32 = arith.constant 3 : i32
    %67 = vector.broadcast %c3_i32 : i32 to vector<8x1xi32>
    %68 = arith.cmpi eq, %43, %67 : vector<8x1xi32>
    %69 = arith.extui %68 : vector<8x1xi1> to vector<8x1xi32>
    %70 = arith.sitofp %69 : vector<8x1xi32> to vector<8x1xf32>
    %71 = vector.extract_strided_slice %15 {offsets = [0, 1280], sizes = [8, 256], strides = [1, 1]} : vector<8x1536xf32> to vector<8x256xf32>
    %72 = vector.broadcast %70 : vector<8x1xf32> to vector<8x256xf32>
    %73 = arith.mulf %72, %71 : vector<8x256xf32>
    %74 = arith.addf %66, %73 : vector<8x256xf32>
    %75 = arith.truncf %74 : vector<8x256xf32> to vector<8x256xbf16>
    %c0_31 = arith.constant 0 : index
    %c0_32 = arith.constant 0 : index
    %76 = vector.load %arg12[%c0_31, %c0_32] : memref<256x512xi8, #tpu.memory_space<vmem>>, vector<256x512xi8>
    %77 = arith.sitofp %76 : vector<256x512xi8> to vector<256x512xbf16>
    %cst_33 = arith.constant dense<0.000000e+00> : vector<8x512xf32>
    %78 = tpu.matmul %75, %77, %cst_33 {dimension_numbers = #tpu.dot_dimension_numbers<[1], [0], [0], [1], [0, 0, 1, 1], [], []>} : vector<8x256xbf16>, vector<256x512xbf16>, vector<8x512xf32> -> vector<8x512xf32>
    %c0_34 = arith.constant 0 : index
    %c0_35 = arith.constant 0 : index
    %79 = vector.load %arg13[%c0_34, %c0_35] : memref<1x512xf32, #tpu.memory_space<vmem>>, vector<1x512xf32>
    %80 = vector.broadcast %79 : vector<1x512xf32> to vector<8x512xf32>
    %81 = arith.mulf %78, %80 : vector<8x512xf32>
    %c0_36 = arith.constant 0 : index
    %c0_37 = arith.constant 0 : index
    %82 = vector.load %arg14[%c0_36, %c0_37] : memref<1x512xf32, #tpu.memory_space<vmem>>, vector<1x512xf32>
    %83 = vector.broadcast %82 : vector<1x512xf32> to vector<8x512xf32>
    %84 = arith.addf %81, %83 : vector<8x512xf32>
    %cst_38 = arith.constant 0.000000e+00 : f32
    %85 = vector.broadcast %cst_38 : f32 to vector<8x512xf32>
    %86 = arith.maximumf %84, %85 : vector<8x512xf32>
    %87 = arith.truncf %86 : vector<8x512xf32> to vector<8x512xbf16>
    %c0_39 = arith.constant 0 : index
    %c0_40 = arith.constant 0 : index
    %88 = vector.load %arg15[%c0_39, %c0_40] : memref<512x256xi8, #tpu.memory_space<vmem>>, vector<512x256xi8>
    %89 = arith.sitofp %88 : vector<512x256xi8> to vector<512x256xbf16>
    %cst_41 = arith.constant dense<0.000000e+00> : vector<8x256xf32>
    %90 = tpu.matmul %87, %89, %cst_41 {dimension_numbers = #tpu.dot_dimension_numbers<[1], [0], [0], [1], [0, 0, 1, 1], [], []>} : vector<8x512xbf16>, vector<512x256xbf16>, vector<8x256xf32> -> vector<8x256xf32>
    %c0_42 = arith.constant 0 : index
    %c0_43 = arith.constant 0 : index
    %91 = vector.load %arg16[%c0_42, %c0_43] : memref<1x256xf32, #tpu.memory_space<vmem>>, vector<1x256xf32>
    %92 = vector.broadcast %91 : vector<1x256xf32> to vector<8x256xf32>
    %93 = arith.mulf %90, %92 : vector<8x256xf32>
    %c0_44 = arith.constant 0 : index
    %c0_45 = arith.constant 0 : index
    %94 = vector.load %arg17[%c0_44, %c0_45] : memref<1x256xf32, #tpu.memory_space<vmem>>, vector<1x256xf32>
    %95 = vector.broadcast %94 : vector<1x256xf32> to vector<8x256xf32>
    %96 = arith.addf %93, %95 : vector<8x256xf32>
    %cst_46 = arith.constant 0.000000e+00 : f32
    %97 = vector.broadcast %cst_46 : f32 to vector<8x256xf32>
    %98 = arith.maximumf %96, %97 : vector<8x256xf32>
    %99 = arith.truncf %98 : vector<8x256xf32> to vector<8x256xbf16>
    %c0_47 = arith.constant 0 : index
    %c0_48 = arith.constant 0 : index
    %100 = vector.load %arg18[%c0_47, %c0_48] : memref<256x128xi8, #tpu.memory_space<vmem>>, vector<256x128xi8>
    %101 = arith.sitofp %100 : vector<256x128xi8> to vector<256x128xbf16>
    %cst_49 = arith.constant dense<0.000000e+00> : vector<8x128xf32>
    %102 = tpu.matmul %99, %101, %cst_49 {dimension_numbers = #tpu.dot_dimension_numbers<[1], [0], [0], [1], [0, 0, 1, 1], [], []>} : vector<8x256xbf16>, vector<256x128xbf16>, vector<8x128xf32> -> vector<8x128xf32>
    %c0_50 = arith.constant 0 : index
    %c0_51 = arith.constant 0 : index
    %103 = vector.load %arg19[%c0_50, %c0_51] : memref<1x128xf32, #tpu.memory_space<vmem>>, vector<1x128xf32>
    %104 = vector.broadcast %103 : vector<1x128xf32> to vector<8x128xf32>
    %105 = arith.mulf %102, %104 : vector<8x128xf32>
    %c0_52 = arith.constant 0 : index
    %c0_53 = arith.constant 0 : index
    %106 = vector.load %arg20[%c0_52, %c0_53] : memref<1x128xf32, #tpu.memory_space<vmem>>, vector<1x128xf32>
    %107 = vector.broadcast %106 : vector<1x128xf32> to vector<8x128xf32>
    %108 = arith.addf %105, %107 : vector<8x128xf32>
    %cst_54 = arith.constant 0.000000e+00 : f32
    %109 = vector.broadcast %cst_54 : f32 to vector<8x128xf32>
    %110 = arith.maximumf %108, %109 : vector<8x128xf32>
    %c0_55 = arith.constant 0 : index
    %c0_56 = arith.constant 0 : index
    %111 = vector.load %arg21[%c0_55, %c0_56] : memref<1x128xf32, #tpu.memory_space<vmem>>, vector<1x128xf32>
    %112 = vector.broadcast %111 : vector<1x128xf32> to vector<8x128xf32>
    %113 = arith.mulf %42, %112 : vector<8x128xf32>
    %cst_57 = arith.constant dense<0.000000e+00> : vector<8xf32>
    %114 = vector.multi_reduction <add>, %113, %cst_57 [1] : vector<8x128xf32> to vector<8xf32>
    %115 = vector.shape_cast %114 : vector<8xf32> to vector<8x1xf32>
    %c0_58 = arith.constant 0 : index
    %c0_59 = arith.constant 0 : index
    %116 = vector.load %arg22[%c0_58, %c0_59] : memref<1x128xf32, #tpu.memory_space<vmem>>, vector<1x128xf32>
    %117 = vector.broadcast %116 : vector<1x128xf32> to vector<8x128xf32>
    %118 = arith.mulf %110, %117 : vector<8x128xf32>
    %cst_60 = arith.constant dense<0.000000e+00> : vector<8xf32>
    %119 = vector.multi_reduction <add>, %118, %cst_60 [1] : vector<8x128xf32> to vector<8xf32>
    %120 = vector.shape_cast %119 : vector<8xf32> to vector<8x1xf32>
    %121 = arith.addf %115, %120 : vector<8x1xf32>
    %c0_61 = arith.constant 0 : index
    %c0_62 = arith.constant 0 : index
    %122 = vector.load %arg23[%c0_61, %c0_62] : memref<1x1xf32, #tpu.memory_space<vmem>>, vector<1x1xf32>
    %123 = vector.broadcast %122 : vector<1x1xf32> to vector<8x1xf32>
    %124 = arith.addf %121, %123 : vector<8x1xf32>
    %125 = arith.negf %124 : vector<8x1xf32>
    %126 = math.exp %125 : vector<8x1xf32>
    %cst_63 = arith.constant 1.000000e+00 : f32
    %127 = vector.broadcast %cst_63 : f32 to vector<8x1xf32>
    %128 = arith.addf %127, %126 : vector<8x1xf32>
    %129 = arith.divf %127, %128 : vector<8x1xf32>
    %130 = vector.shape_cast %129 : vector<8x1xf32> to vector<8x1xf32>
    %131 = vector.broadcast %130 : vector<8x1xf32> to vector<8x128xf32>
    %c0_64 = arith.constant 0 : index
    %c0_65 = arith.constant 0 : index
    %132 = vector.load %arg24[%c0_64, %c0_65] : memref<8x128xf32, #tpu.memory_space<vmem>>, vector<8x128xf32>
    tpu.vector_store %arg24[%c0_64, %c0_65], %131 {strides = array<i32>} : memref<8x128xf32, #tpu.memory_space<vmem>>, vector<8x128xf32>,
    return
  }
}

</mosaic_0001>

<bundles_post_ra>
// kernel: star_forward.1
= control target key start
LH: loop header
LB: loop body
LE: loop exit
PB: predicated region body
PF: predicated region fallthrough
CT: control target
= control target key end

     0   :  { %s2993_s0 = inlined_call_operand.hbm [shape: f32[8,128], index: 0, kind: input, shape index: {}]   ;;  %s2994_s1 = inlined_call_operand.hbm [shape: f32[8,8,128], index: 1, kind: input, shape index: {}]   ;;  %s2995_s2 = inlined_call_operand.vmem [shape: s32[8,1], index: 2, kind: input, shape index: {}]   ;;  %s2996_s3 = inlined_call_operand.hbm [shape: s8[256,1536], index: 3, kind: input, shape index: {}]   ;;  %s2997_s4 = inlined_call_operand.vmem [shape: f32[1,1536], index: 4, kind: input, shape index: {}]   ;;  %s2998_s5 = inlined_call_operand.hbm [shape: f32[1,1536], index: 5, kind: input, shape index: {}]   ;;  %s2999_s6 = inlined_call_operand.hbm [shape: s8[512,256], index: 6, kind: input, shape index: {}]   ;;  %s3000_s7 = inlined_call_operand.hbm [shape: f32[1,256], index: 7, kind: input, shape index: {}]   ;;  %s3001_s8 = inlined_call_operand.hbm [shape: f32[1,256], index: 8, kind: input, shape index: {}]   ;;  %s3002_s9 = inlined_call_operand.hbm [shape: s8[256,128], index: 9, kind: input, shape index: {}]   ;;  %s3003_s10 = inlined_call_operand.hbm [shape: f32[1,128], index: 10, kind: input, shape index: {}]   ;;  %s3004_s11 = inlined_call_operand.hbm [shape: f32[1,128], index: 11, kind: input, shape index: {}]   ;;  %s3005_s12 = inlined_call_operand.hbm [shape: s8[256,512], index: 12, kind: input, shape index: {}]   ;;  %s3006_s13 = inlined_call_operand.vmem [shape: f32[1,512], index: 13, kind: input, shape index: {}]   ;;  %s3007_s14 = inlined_call_operand.hbm [shape: f32[1,512], index: 14, kind: input, shape index: {}]   ;;  %s3008_s15 = inlined_call_operand.hbm [shape: s8[512,256], index: 15, kind: input, shape index: {}]   ;;  %s3009_s16 = inlined_call_operand.hbm [shape: f32[1,256], index: 16, kind: input, shape index: {}]   ;;  %s3010_s17 = inlined_call_operand.hbm [shape: f32[1,256], index: 17, kind: input, shape index: {}]   ;;  %s3011_s18 = inlined_call_operand.vmem [shape: s8[256,128], index: 18, kind: input, shape index: {}]   ;;  %s3012_s19 = inlined_call_operand.vmem [shape: f32[1,128], index: 19, kind: input, shape index: {}]   ;;  %s3013_s20 = inlined_call_operand.vmem [shape: f32[1,128], index: 20, kind: input, shape index: {}]   ;;  %s3014_s21 = inlined_call_operand.vmem [shape: f32[1,128], index: 21, kind: input, shape index: {}]   ;;  %s3015_s22 = inlined_call_operand.vmem [shape: f32[1,128], index: 22, kind: input, shape index: {}]   ;;  %s3016_s23 = inlined_call_operand.<no memory space> [shape: f32[1,1], index: 23, kind: input, shape index: {}]   ;;  %s3017_s24 = inlined_call_operand.vmem [shape: f32[8,128], index: 24, kind: output, shape index: {}]  }
   0x1   :  { %3026 = sst [smem:[#allocation34_spill]] %s2993_s0  ;;  %v29_v0 = vstv %s3016_s23 }
   0x2   :  { %3027 = sst [smem:[#allocation35_spill]] %s2994_s1  ;;  %30 = vst [vmem:[#allocation2] sm:$0x1] %v29_v0 }
   0x3   :  { %3028 = sst [smem:[#allocation36_spill]] %s2995_s2 }
   0x4   :  { %3029 = sst [smem:[#allocation37_spill]] %s2996_s3 }
   0x5   :  { %3030 = sst [smem:[#allocation38_spill]] %s2997_s4 }
   0x6   :  { %3031 = sst [smem:[#allocation39_spill]] %s2998_s5 }
   0x7   :  { %3032 = sst [smem:[#allocation40_spill]] %s2999_s6 }
   0x8   :  { %3033 = sst [smem:[#allocation41_spill]] %s3000_s7 }
   0x9   :  { %3034 = sst [smem:[#allocation42_spill]] %s3001_s8 }
   0xa   :  { %3035 = sst [smem:[#allocation43_spill]] %s3015_s22 }
   0xb   :  { %3036 = sst [smem:[#allocation44_spill]] %s3017_s24 }
   0xc   :  { %31 = vsyncpa [#allocation4], 0 }
   0xd   :  { %32 = vsyncpa [#allocation6], 0 }
   0xe   :  { %33 = vsyncpa [#allocation9], 0 }
   0xf   :  { %34 = vsyncpa [#allocation12], 0 }
  0x10   :  { %35 = vsyncpa [#allocation15], 0 }
  0x11   :  { %36 = vsyncpa [#allocation18], 0 }
  0x12   :  { %37 = vsyncpa [#allocation21], 0 }
  0x13   :  { %38 = vsyncpa [#allocation24], 0  ;;  %s2417_s27 = smov [#allocation5]   ;;  %s3037_s29 = sld [smem:[#allocation35_spill]] }
  0x14   :  { %s54_s28 = sshll.u32 %s2417_s27, 4  ;;  %s55_s28 = int_to_ptr.vmem [resolvable:$true] %s54_s28 }
  0x19   :  { %s2071_s0 = scalar_lea.hbm %s3037_s29, 1024 }
  0x1a   :  { %p2072_p0 = scmp.ne.s32.totalorder %s3037_s29, %s2071_s0  ;;  %p2075_p1 = scmp.lt.u32.totalorder %s2071_s0, %s3037_s29 }
  0x1c   :  { %p2077_p2 = pnand %p2075_p1, %p2072_p0 }
  0x1e   :  { %2080 = shalt.err (!%p2077_p2)
}
  0x1f   :  { %s2081_s25 = scalar_lea.vmem %s55_s28, 1024  ;;  %p2086_p4 = scmp.lt.s32.totalorder %s55_s28, %s55_s28 }
  0x20   :  { %p2082_p3 = scmp.ne.s32.totalorder %s55_s28, %s2081_s25  ;;  %p2087_p5 = scmp.lt.s32.totalorder %s2081_s25, %s2081_s25 }
  0x22   :  { %p2088_p6 = por %p2087_p5, %p2086_p4 }
  0x24   :  { %p2089_p7 = pnand %p2088_p6, %p2082_p3 }
  0x26   :  { %2092 = shalt.err (!%p2089_p7)
}
  0x27   :  { %s2418_s8 = smov 128   ;;  %s2419_s4 = smov 8  }
  0x28   :  { %60 = dma.hbm_to_vmem [thread:$0]  %s3037_s29, 1024, %s55_s28, [#allocation6], %s2418_s8, %s2418_s8, %s2419_s4  }
  0x29   :  { %s2420_s26 = smov [#allocation8]   ;;  %s2421_s6 = smov [#allocation11]  }
  0x2a   :  { %s83_s27 = sshll.u32 %s2420_s26, 4  ;;  %s105_s2 = sshll.u32 %s2421_s6, 4  ;;  %s84_s27 = int_to_ptr.vmem [resolvable:$true] %s83_s27  ;;  %s106_s2 = int_to_ptr.vmem [resolvable:$true] %s105_s2 }
  0x2b   :  { %s3038_s30 = sld [smem:[#allocation39_spill]] }
  0x31   :  { %s2093_s23 = scalar_lea.hbm %s3038_s30, 192 }
  0x32   :  { %p2094_p8 = scmp.ne.s32.totalorder %s3038_s30, %s2093_s23  ;;  %p2097_p9 = scmp.lt.u32.totalorder %s2093_s23, %s3038_s30 }
  0x34   :  { %p2099_p10 = pnand %p2097_p9, %p2094_p8 }
  0x36   :  { %2102 = shalt.err (!%p2099_p10)
}
  0x37   :  { %s2103_s28 = scalar_lea.vmem %s84_s27, 192  ;;  %p2108_p12 = scmp.lt.s32.totalorder %s84_s27, %s84_s27 }
  0x38   :  { %p2104_p11 = scmp.ne.s32.totalorder %s84_s27, %s2103_s28  ;;  %p2109_p13 = scmp.lt.s32.totalorder %s2103_s28, %s2103_s28 }
  0x3a   :  { %p2110_p0 = por %p2109_p13, %p2108_p12 }
  0x3c   :  { %p2111_p1 = pnand %p2110_p0, %p2104_p11 }
  0x3e   :  { %2114 = shalt.err (!%p2111_p1)
}
  0x3f   :  { %86 = dma.hbm_to_vmem [thread:$0]  %s3038_s30, 192, %s84_s27, [#allocation9]  }
  0x40   :  { %s3039_s6 = sld [smem:[#allocation41_spill]] }
  0x46   :  { %s2115_s0 = scalar_lea.hbm %s3039_s6, 32 }
  0x47   :  { %p2116_p2 = scmp.ne.s32.totalorder %s3039_s6, %s2115_s0  ;;  %p2119_p3 = scmp.lt.u32.totalorder %s2115_s0, %s3039_s6 }
  0x49   :  { %p2121_p4 = pnand %p2119_p3, %p2116_p2 }
  0x4b   :  { %2124 = shalt.err (!%p2121_p4)
}
  0x4c   :  { %s2125_s3 = scalar_lea.vmem %s106_s2, 32  ;;  %p2130_p6 = scmp.lt.s32.totalorder %s106_s2, %s106_s2 }
  0x4d   :  { %p2126_p5 = scmp.ne.s32.totalorder %s106_s2, %s2125_s3  ;;  %p2131_p7 = scmp.lt.s32.totalorder %s2125_s3, %s2125_s3 }
  0x4f   :  { %p2132_p8 = por %p2131_p7, %p2130_p6 }
  0x51   :  { %p2133_p9 = pnand %p2132_p8, %p2126_p5 }
  0x53   :  { %2136 = shalt.err (!%p2133_p9)
}
  0x54   :  { %108 = dma.hbm_to_vmem [thread:$0]  %s3039_s6, 32, %s106_s2, [#allocation12]  }
  0x55   :  { %s2422_s25 = smov [#allocation14]   ;;  %s2423_s29 = smov [#allocation17]  }
  0x56   :  { %s124_s28 = sshll.u32 %s2422_s25, 4  ;;  %s147_s1 = sshll.u32 %s2423_s29, 4  ;;  %s125_s28 = int_to_ptr.vmem [resolvable:$true] %s124_s28  ;;  %s148_s1 = int_to_ptr.vmem [resolvable:$true] %s147_s1 }
  0x57   :  { %s2137_s0 = scalar_lea.hbm %s3002_s9, 1024 }
  0x58   :  { %p2138_p10 = scmp.ne.s32.totalorder %s3002_s9, %s2137_s0  ;;  %p2141_p11 = scmp.lt.u32.totalorder %s2137_s0, %s3002_s9 }
  0x5a   :  { %p2143_p12 = pnand %p2141_p11, %p2138_p10 }
  0x5c   :  { %2146 = shalt.err (!%p2143_p12)
}
  0x5d   :  { %s2147_s2 = scalar_lea.vmem %s125_s28, 1024  ;;  %p2152_p0 = scmp.lt.s32.totalorder %s125_s28, %s125_s28 }
  0x5e   :  { %p2148_p13 = scmp.ne.s32.totalorder %s125_s28, %s2147_s2  ;;  %p2153_p1 = scmp.lt.s32.totalorder %s2147_s2, %s2147_s2 }
  0x60   :  { %p2154_p2 = por %p2153_p1, %p2152_p0 }
  0x62   :  { %p2155_p3 = pnand %p2154_p2, %p2148_p13 }
  0x64   :  { %2158 = shalt.err (!%p2155_p3)
}
  0x65   :  { %130 = dma.hbm_to_vmem [thread:$0]  %s3002_s9, 1024, %s125_s28, [#allocation15], %s2418_s8, %s2418_s8, %s2419_s4  }
  0x66   :  { %s2159_s25 = scalar_lea.hbm %s3004_s11, 16 }
  0x67   :  { %p2160_p4 = scmp.ne.s32.totalorder %s3004_s11, %s2159_s25  ;;  %p2163_p5 = scmp.lt.u32.totalorder %s2159_s25, %s3004_s11 }
  0x69   :  { %p2165_p6 = pnand %p2163_p5, %p2160_p4 }
  0x6b   :  { %2168 = shalt.err (!%p2165_p6)
}
  0x6c   :  { %s2169_s22 = scalar_lea.vmem %s148_s1, 16  ;;  %s2173_s24 = scalar_lea.vmem %s148_s1, 32 }
  0x6d   :  { %p2170_p7 = scmp.ne.s32.totalorder %s148_s1, %s2169_s22  ;;  %p2174_p8 = scmp.lt.s32.totalorder %s148_s1, %s148_s1 }
  0x6e   :  { %p2175_p9 = scmp.lt.s32.totalorder %s2173_s24, %s2169_s22 }
  0x70   :  { %p2176_p10 = por %p2175_p9, %p2174_p8 }
  0x72   :  { %p2177_p11 = pnand %p2176_p10, %p2170_p7 }
  0x74   :  { %2180 = shalt.err (!%p2177_p11)
}
  0x75   :  { %150 = dma.hbm_to_vmem [thread:$0]  %s3004_s11, 16, %s148_s1, [#allocation18]  }
  0x76   :  { %s2424_s4 = smov [#allocation20]   ;;  %s2425_s7 = smov [#allocation23]  }
  0x77   :  { %s171_s28 = sshll.u32 %s2424_s4, 4  ;;  %s193_s23 = sshll.u32 %s2425_s7, 4  ;;  %s172_s28 = int_to_ptr.vmem [resolvable:$true] %s171_s28  ;;  %s194_s23 = int_to_ptr.vmem [resolvable:$true] %s193_s23 }
  0x78   :  { %s2181_s3 = scalar_lea.hbm %s3007_s14, 64 }
  0x79   :  { %p2182_p12 = scmp.ne.s32.totalorder %s3007_s14, %s2181_s3  ;;  %p2185_p13 = scmp.lt.u32.totalorder %s2181_s3, %s3007_s14 }
  0x7b   :  { %p2187_p0 = pnand %p2185_p13, %p2182_p12 }
  0x7d   :  { %2190 = shalt.err (!%p2187_p0)
}
  0x7e   :  { %s2191_s11 = scalar_lea.vmem %s172_s28, 64  ;;  %p2196_p2 = scmp.lt.s32.totalorder %s172_s28, %s172_s28 }
  0x7f   :  { %p2192_p1 = scmp.ne.s32.totalorder %s172_s28, %s2191_s11  ;;  %p2197_p3 = scmp.lt.s32.totalorder %s2191_s11, %s2191_s11 }
  0x81   :  { %p2198_p4 = por %p2197_p3, %p2196_p2 }
  0x83   :  { %p2199_p5 = pnand %p2198_p4, %p2192_p1 }
  0x85   :  { %2202 = shalt.err (!%p2199_p5)
}
  0x86   :  { %174 = dma.hbm_to_vmem [thread:$0]  %s3007_s14, 64, %s172_s28, [#allocation21]  }
  0x87   :  { %s2203_s22 = scalar_lea.hbm %s3009_s16, 32 }
  0x88   :  { %p2204_p6 = scmp.ne.s32.totalorder %s3009_s16, %s2203_s22  ;;  %p2207_p7 = scmp.lt.u32.totalorder %s2203_s22, %s3009_s16 }
  0x8a   :  { %p2209_p8 = pnand %p2207_p7, %p2204_p6 }
  0x8c   :  { %2212 = shalt.err (!%p2209_p8)
}
  0x8d   :  { %s2213_s7 = scalar_lea.vmem %s194_s23, 32  ;;  %p2218_p10 = scmp.lt.s32.totalorder %s194_s23, %s194_s23 }
  0x8e   :  { %p2214_p9 = scmp.ne.s32.totalorder %s194_s23, %s2213_s7  ;;  %p2219_p11 = scmp.lt.s32.totalorder %s2213_s7, %s2213_s7 }
  0x90   :  { %p2220_p12 = por %p2219_p11, %p2218_p10 }
  0x92   :  { %p2221_p13 = pnand %p2220_p12, %p2214_p9 }
  0x94   :  { %2224 = shalt.err (!%p2221_p13)
}
  0x95   :  { %196 = dma.hbm_to_vmem [thread:$0]  %s3009_s16, 32, %s194_s23, [#allocation24]  }
  0x96   :  { %s2426_s2 = smov [#allocation3]   ;;  %s2427_s3 = smov [#allocation7]  }
  0x97   :  { %s45_s6 = sshll.u32 %s2426_s2, 4  ;;  %s68_s27 = sshll.u32 %s2427_s3, 4  ;;  %s46_s6 = int_to_ptr.vmem [resolvable:$true] %s45_s6  ;;  %s69_s27 = int_to_ptr.vmem [resolvable:$true] %s68_s27 }
  0x98   :  { %s3040_s29 = sld [smem:[#allocation34_spill]] }
  0x9e   :  { %s2225_s11 = scalar_lea.hbm %s3040_s29, 128 }
  0x9f   :  { %p2226_p0 = scmp.ne.s32.totalorder %s3040_s29, %s2225_s11  ;;  %p2229_p1 = scmp.lt.u32.totalorder %s2225_s11, %s3040_s29 }
  0xa1   :  { %p2231_p2 = pnand %p2229_p1, %p2226_p0 }
  0xa3   :  { %2234 = shalt.err (!%p2231_p2)
}
  0xa4   :  { %s2235_s16 = scalar_lea.vmem %s46_s6, 128  ;;  %p2240_p4 = scmp.lt.s32.totalorder %s46_s6, %s46_s6 }
  0xa5   :  { %p2236_p3 = scmp.ne.s32.totalorder %s46_s6, %s2235_s16  ;;  %p2241_p5 = scmp.lt.s32.totalorder %s2235_s16, %s2235_s16 }
  0xa7   :  { %p2242_p6 = por %p2241_p5, %p2240_p4 }
  0xa9   :  { %p2243_p7 = pnand %p2242_p6, %p2236_p3 }
  0xab   :  { %2246 = shalt.err (!%p2243_p7)
}
  0xac   :  { %48 = dma.hbm_to_vmem [thread:$0]  %s3040_s29, 128, %s46_s6, [#allocation4]  }
  0xad   :  { %s3041_s8 = sld [smem:[#allocation37_spill]] }
  0xb3   :  { %s2247_s4 = scalar_lea.hbm %s3041_s8, 12288 }
  0xb4   :  { %p2248_p8 = scmp.ne.s32.totalorder %s3041_s8, %s2247_s4  ;;  %p2251_p9 = scmp.lt.u32.totalorder %s2247_s4, %s3041_s8 }
  0xb6   :  { %p2253_p10 = pnand %p2251_p9, %p2248_p8 }
  0xb8   :  { %2256 = shalt.err (!%p2253_p10)
}
  0xb9   :  { %s2257_s3 = scalar_lea.vmem %s69_s27, 12288  ;;  %p2262_p12 = scmp.lt.s32.totalorder %s69_s27, %s69_s27 }
  0xba   :  { %p2258_p11 = scmp.ne.s32.totalorder %s69_s27, %s2257_s3  ;;  %p2263_p13 = scmp.lt.s32.totalorder %s2257_s3, %s2257_s3 }
  0xbc   :  { %p2264_p0 = por %p2263_p13, %p2262_p12 }
  0xbe   :  { %p2265_p1 = pnand %p2264_p0, %p2258_p11 }
  0xc0   :  { %2268 = shalt.err (!%p2265_p1)
}
  0xc1   :  { %s2428_s6 = smov 1536   ;;  %s2429_s30 = smov 96  }
  0xc2   :  { %74 = dma.hbm_to_vmem [thread:$0]  %s3041_s8, 12288, %s69_s27, [#allocation6], %s2428_s6, %s2428_s6, %s2429_s30  }
  0xc3   :  { %s2430_s11 = smov [#allocation10]   ;;  %s3042_s0 = sld [smem:[#allocation40_spill]] }
  0xc4   :  { %s92_s1 = sshll.u32 %s2430_s11, 4  ;;  %s93_s1 = int_to_ptr.vmem [resolvable:$true] %s92_s1 }
  0xc9   :  { %s2269_s16 = scalar_lea.hbm %s3042_s0, 4096 }
  0xca   :  { %p2270_p2 = scmp.ne.s32.totalorder %s3042_s0, %s2269_s16  ;;  %p2273_p3 = scmp.lt.u32.totalorder %s2269_s16, %s3042_s0 }
  0xcc   :  { %p2275_p4 = pnand %p2273_p3, %p2270_p2 }
  0xce   :  { %2278 = shalt.err (!%p2275_p4)
}
  0xcf   :  { %s2279_s4 = scalar_lea.vmem %s93_s1, 4096  ;;  %p2284_p6 = scmp.lt.s32.totalorder %s93_s1, %s93_s1 }
  0xd0   :  { %p2280_p5 = scmp.ne.s32.totalorder %s93_s1, %s2279_s4  ;;  %p2285_p7 = scmp.lt.s32.totalorder %s2279_s4, %s2279_s4 }
  0xd2   :  { %p2286_p8 = por %p2285_p7, %p2284_p6 }
  0xd4   :  { %p2287_p9 = pnand %p2286_p8, %p2280_p5 }
  0xd6   :  { %2290 = shalt.err (!%p2287_p9)
}
  0xd7   :  { %s2431_s27 = smov 256   ;;  %s2432_s8 = smov 16  }
  0xd8   :  { %98 = dma.hbm_to_vmem [thread:$0]  %s3042_s0, 4096, %s93_s1, [#allocation9], %s2431_s27, %s2431_s27, %s2432_s8  }
  0xd9   :  { %s2433_s28 = smov [#allocation13]   ;;  %s2434_s3 = smov [#allocation16]  }
  0xda   :  { %s115_s2 = sshll.u32 %s2433_s28, 4  ;;  %s137_s6 = sshll.u32 %s2434_s3, 4  ;;  %s116_s2 = int_to_ptr.vmem [resolvable:$true] %s115_s2  ;;  %s138_s6 = int_to_ptr.vmem [resolvable:$true] %s137_s6 }
  0xdb   :  { %s3043_s29 = sld [smem:[#allocation42_spill]] }
  0xe1   :  { %s2291_s11 = scalar_lea.hbm %s3043_s29, 32 }
  0xe2   :  { %p2292_p10 = scmp.ne.s32.totalorder %s3043_s29, %s2291_s11  ;;  %p2295_p11 = scmp.lt.u32.totalorder %s2291_s11, %s3043_s29 }
  0xe4   :  { %p2297_p12 = pnand %p2295_p11, %p2292_p10 }
  0xe6   :  { %2300 = shalt.err (!%p2297_p12)
}
  0xe7   :  { %s2301_s1 = scalar_lea.vmem %s116_s2, 32  ;;  %p2306_p0 = scmp.lt.s32.totalorder %s116_s2, %s116_s2 }
  0xe8   :  { %p2302_p13 = scmp.ne.s32.totalorder %s116_s2, %s2301_s1  ;;  %p2307_p1 = scmp.lt.s32.totalorder %s2301_s1, %s2301_s1 }
  0xea   :  { %p2308_p2 = por %p2307_p1, %p2306_p0 }
  0xec   :  { %p2309_p3 = pnand %p2308_p2, %p2302_p13 }
  0xee   :  { %2312 = shalt.err (!%p2309_p3)
}
  0xef   :  { %118 = dma.hbm_to_vmem [thread:$0]  %s3043_s29, 32, %s116_s2, [#allocation12]  }
  0xf0   :  { %s2313_s4 = scalar_lea.hbm %s3003_s10, 16 }
  0xf1   :  { %p2314_p4 = scmp.ne.s32.totalorder %s3003_s10, %s2313_s4  ;;  %p2317_p5 = scmp.lt.u32.totalorder %s2313_s4, %s3003_s10 }
  0xf3   :  { %p2319_p6 = pnand %p2317_p5, %p2314_p4 }
  0xf5   :  { %2322 = shalt.err (!%p2319_p6)
}
  0xf6   :  { %s2323_s30 = scalar_lea.vmem %s138_s6, 16  ;;  %s2327_s25 = scalar_lea.vmem %s138_s6, 32 }
  0xf7   :  { %p2324_p7 = scmp.ne.s32.totalorder %s138_s6, %s2323_s30  ;;  %p2328_p8 = scmp.lt.s32.totalorder %s138_s6, %s138_s6 }
  0xf8   :  { %p2329_p9 = scmp.lt.s32.totalorder %s2327_s25, %s2323_s30 }
  0xfa   :  { %p2330_p10 = por %p2329_p9, %p2328_p8 }
  0xfc   :  { %p2331_p11 = pnand %p2330_p10, %p2324_p7 }
  0xfe   :  { %2334 = shalt.err (!%p2331_p11)
}
  0xff   :  { %140 = dma.hbm_to_vmem [thread:$0]  %s3003_s10, 16, %s138_s6, [#allocation15]  }
 0x100   :  { %s2435_s11 = smov [#allocation19]   ;;  %s2335_s23 = scalar_lea.hbm %s3005_s12, 4096 }
 0x101   :  { %s156_s5 = sshll.u32 %s2435_s11, 4  ;;  %p2336_p12 = scmp.ne.s32.totalorder %s3005_s12, %s2335_s23  ;;  %s157_s5 = int_to_ptr.vmem [resolvable:$true] %s156_s5 }
 0x102   :  { %p2339_p13 = scmp.lt.u32.totalorder %s2335_s23, %s3005_s12 }
 0x104   :  { %p2341_p0 = pnand %p2339_p13, %p2336_p12 }
 0x106   :  { %2344 = shalt.err (!%p2341_p0)
}
 0x107   :  { %s2345_s9 = scalar_lea.vmem %s157_s5, 4096  ;;  %p2350_p2 = scmp.lt.s32.totalorder %s157_s5, %s157_s5 }
 0x108   :  { %p2346_p1 = scmp.ne.s32.totalorder %s157_s5, %s2345_s9  ;;  %p2351_p3 = scmp.lt.s32.totalorder %s2345_s9, %s2345_s9 }
 0x10a   :  { %p2352_p4 = por %p2351_p3, %p2350_p2 }
 0x10c   :  { %p2353_p5 = pnand %p2352_p4, %p2346_p1 }
 0x10e   :  { %2356 = shalt.err (!%p2353_p5)
}
 0x10f   :  { %s2436_s10 = smov 512   ;;  %s2437_s6 = smov 32  }
 0x110   :  { %162 = dma.hbm_to_vmem [thread:$0]  %s3005_s12, 4096, %s157_s5, [#allocation18], %s2436_s10, %s2436_s10, %s2437_s6  }
 0x111   :  { %s2438_s14 = smov [#allocation22]   ;;  %s2439_s3 = smov [#allocation25]  }
 0x112   :  { %s180_s28 = sshll.u32 %s2438_s14, 4  ;;  %s203_s30 = sshll.u32 %s2439_s3, 4  ;;  %s181_s28 = int_to_ptr.vmem [resolvable:$true] %s180_s28  ;;  %s204_s30 = int_to_ptr.vmem [resolvable:$true] %s203_s30 }
 0x113   :  { %s2357_s29 = scalar_lea.hbm %s3008_s15, 4096 }
 0x114   :  { %p2358_p6 = scmp.ne.s32.totalorder %s3008_s15, %s2357_s29  ;;  %p2361_p7 = scmp.lt.u32.totalorder %s2357_s29, %s3008_s15 }
 0x116   :  { %p2363_p8 = pnand %p2361_p7, %p2358_p6 }
 0x118   :  { %2366 = shalt.err (!%p2363_p8)
}
 0x119   :  { %s2367_s12 = scalar_lea.vmem %s181_s28, 4096  ;;  %p2372_p10 = scmp.lt.s32.totalorder %s181_s28, %s181_s28 }
 0x11a   :  { %p2368_p9 = scmp.ne.s32.totalorder %s181_s28, %s2367_s12  ;;  %p2373_p11 = scmp.lt.s32.totalorder %s2367_s12, %s2367_s12 }
 0x11c   :  { %p2374_p12 = por %p2373_p11, %p2372_p10 }
 0x11e   :  { %p2375_p13 = pnand %p2374_p12, %p2368_p9 }
 0x120   :  { %2378 = shalt.err (!%p2375_p13)
}
 0x121   :  { %186 = dma.hbm_to_vmem [thread:$0]  %s3008_s15, 4096, %s181_s28, [#allocation21], %s2431_s27, %s2431_s27, %s2432_s8  }
 0x122   :  { %s2379_s24 = scalar_lea.hbm %s3010_s17, 32 }
 0x123   :  { %p2380_p0 = scmp.ne.s32.totalorder %s3010_s17, %s2379_s24  ;;  %p2383_p1 = scmp.lt.u32.totalorder %s2379_s24, %s3010_s17 }
 0x125   :  { %p2385_p2 = pnand %p2383_p1, %p2380_p0 }
 0x127   :  { %2388 = shalt.err (!%p2385_p2)
}
 0x128   :  { %s2389_s7 = scalar_lea.vmem %s204_s30, 32  ;;  %p2394_p4 = scmp.lt.s32.totalorder %s204_s30, %s204_s30 }
 0x129   :  { %p2390_p3 = scmp.ne.s32.totalorder %s204_s30, %s2389_s7  ;;  %p2395_p5 = scmp.lt.s32.totalorder %s2389_s7, %s2389_s7 }
 0x12b   :  { %p2396_p6 = por %p2395_p5, %p2394_p4 }
 0x12d   :  { %p2397_p7 = pnand %p2396_p6, %p2390_p3 }
 0x12f   :  { %2400 = shalt.err (!%p2397_p7)
}
 0x130   :  { %206 = dma.hbm_to_vmem [thread:$0]  %s3010_s17, 32, %s204_s30, [#allocation24]  }
 0x131   :  { %2401 = dma.done.wait [#allocation4], 128  }
 0x132   :  { %2402 = vsyncadd [#allocation4], 4294967168 }
 0x133   :  { %2403 = dma.done.wait [#allocation6], 13312  }
 0x134   :  { %2404 = vsyncadd [#allocation6], 4294953984 }
 0x135   :  { %2405 = dma.done.wait [#allocation9], 4288  }
 0x136   :  { %2406 = vsyncadd [#allocation9], 4294963008 }
 0x137   :  { %2407 = dma.done.wait [#allocation12], 64  }
 0x138   :  { %2408 = vsyncadd [#allocation12], 4294967232 }
 0x139   :  { %2409 = dma.done.wait [#allocation15], 1040  }
 0x13a   :  { %2410 = vsyncadd [#allocation15], 4294966256 }
 0x13b   :  { %2411 = dma.done.wait [#allocation18], 4112  }
 0x13c   :  { %2412 = vsyncadd [#allocation18], 4294963184 }
 0x13d   :  { %2413 = dma.done.wait [#allocation21], 4160  }
 0x13e   :  { %2414 = vsyncadd [#allocation21], 4294963136 }
 0x13f   :  { %2415 = dma.done.wait [#allocation24], 64  }
 0x140   :  { %2416 = vsyncadd [#allocation24], 4294967232  ;;  %v356_v1 = vld [vmem:[#allocation7 + $0x8] sm:$0xff]  ;;  %v355_v2 = vld [vmem:[#allocation7] sm:$0xff]  ;;  %vm338_vm0 = vcmask 1041409   ;;  %vm340_vm1 = vcmask 1042434  }
 0x141   :  { %v358_v3 = vld [vmem:[#allocation7 + $0x18] sm:$0xff]  ;;  %v452_v4 = vunpack.c.l.s8.bf16 %v356_v1  ;;  %v464_v5 = vunpack.c.h.s8.bf16 %v356_v1  ;;  %v451_v6 = vunpack.c.l.s8.bf16 %v355_v2  ;;  %v357_v7 = vld [vmem:[#allocation7 + $0x10] sm:$0xff]  ;;  %v368_v11 = vld [vmem:[#allocation7 + $0x68] sm:$0xff]  ;;  %v463_v13 = vunpack.c.h.s8.bf16 %v355_v2  ;;  %s3044_s14 = sld [smem:[#allocation36_spill]]  ;;  %s3045_s30 = sld [smem:[#allocation38_spill]] }
 0x142   :  { %v454_v8 = vunpack.c.l.s8.bf16 %v358_v3  ;;  %v466_v9 = vunpack.c.h.s8.bf16 %v358_v3  ;;  %v453_v10 = vunpack.c.l.s8.bf16 %v357_v7  ;;  %v370_v12 = vld [vmem:[#allocation7 + $0x78] sm:$0xff]  ;;  %v465_v14 = vunpack.c.h.s8.bf16 %v357_v7  ;;  %v367_v16 = vld [vmem:[#allocation7 + $0x60] sm:$0xff]  ;;  %v369_v18 = vld [vmem:[#allocation7 + $0x70] sm:$0xff]  ;;  %s3047_s25 = sld [smem:[#allocation44_spill]] }
 0x143   :  { %643 = vmatprep.subr.bf16.mxu0 %v452_v4  ;;  %v476_v15 = vunpack.c.l.s8.bf16 %v368_v11  ;;  %v478_v17 = vunpack.c.l.s8.bf16 %v370_v12  ;;  %v475_v19 = vunpack.c.l.s8.bf16 %v367_v16  ;;  %v477_v20 = vunpack.c.l.s8.bf16 %v369_v18  ;;  %v2762_v22 = vld [vmem:[#allocation7 + $0xc8] sm:$0xff]  ;;  %v2764_v24 = vld [vmem:[#allocation7 + $0xc0] sm:$0xff]  ;;  %v2766_v25 = vld [vmem:[#allocation7 + $0xd8] sm:$0xff] }
 0x144   :  { %644 = vmatpush1.bf16.msra.mxu0 %v451_v6  ;;  %684 = vmatprep.subr.bf16.mxu1 %v454_v8  ;;  %v488_v21 = vunpack.c.h.s8.bf16 %v368_v11  ;;  %v490_v23 = vunpack.c.h.s8.bf16 %v370_v12  ;;  %v2768_v26 = vld [vmem:[#allocation7 + $0xd0] sm:$0xff]  ;;  %v2770_v27 = vld [vmem:[#allocation7 + $0x128] sm:$0xff]  ;;  %v487_v28 = vunpack.c.h.s8.bf16 %v367_v16  ;;  %v489_v29 = vunpack.c.h.s8.bf16 %v369_v18  ;;  %v2773_v31 = vld [vmem:[#allocation7 + $0x120] sm:$0xff] }
 0x145   :  { %685 = vmatpush1.bf16.msra.mxu1 %v453_v10  ;;  %645 = vmatprep.subr.bf16.mxu0 %v464_v5  ;;  %v500_v30 = vunpack.c.l.s8.bf16 %v2762_v22  ;;  %v2775_v32 = vld [vmem:[#allocation7 + $0x138] sm:$0xff]  ;;  %v2777_v33 = vld [vmem:[#allocation7 + $0x130] sm:$0xff]  ;;  %v499_v34 = vunpack.c.l.s8.bf16 %v2764_v24  ;;  %v502_v35 = vunpack.c.l.s8.bf16 %v2766_v25  ;;  %v501_v36 = vunpack.c.l.s8.bf16 %v2768_v26  ;;  %v265_v38 = vld [vmem:[#allocation5] sm:$0xff] }
 0x146   :  { %686 = vmatprep.subr.bf16.mxu1 %v466_v9  ;;  %v512_v37 = vunpack.c.h.s8.bf16 %v2762_v22  ;;  %v266_v39 = vld [vmem:[#allocation5 + $0x8] sm:$0xff]  ;;  %v511_v40 = vunpack.c.h.s8.bf16 %v2764_v24  ;;  %v514_v41 = vunpack.c.h.s8.bf16 %v2766_v25  ;;  %v513_v42 = vunpack.c.h.s8.bf16 %v2768_v26  ;;  %v267_v44 = vld [vmem:[#allocation5 + $0x10] sm:$0xff]  ;;  %v268_v45 = vld [vmem:[#allocation5 + $0x18] sm:$0xff] }
 0x147   :  { %v524_v43 = vunpack.c.l.s8.bf16 %v2770_v27  ;;  %v269_v46 = vld [vmem:[#allocation5 + $0x20] sm:$0xff]  ;;  %v523_v47 = vunpack.c.l.s8.bf16 %v2773_v31  ;;  %v526_v48 = vunpack.c.l.s8.bf16 %v2775_v32  ;;  %v525_v49 = vunpack.c.l.s8.bf16 %v2777_v33  ;;  %v270_v51 = vld [vmem:[#allocation5 + $0x28] sm:$0xff]  ;;  %v271_v52 = vld [vmem:[#allocation5 + $0x30] sm:$0xff] }
 0x148   :  { %646 = vmatpush1.bf16.msra.mxu0 %v463_v13  ;;  %v536_v50 = vunpack.c.h.s8.bf16 %v2770_v27  ;;  %v272_v53 = vld [vmem:[#allocation5 + $0x38] sm:$0xff]  ;;  %v535_v54 = vunpack.c.h.s8.bf16 %v2773_v31  ;;  %v538_v55 = vunpack.c.h.s8.bf16 %v2775_v32  ;;  %v537_v56 = vunpack.c.h.s8.bf16 %v2777_v33  ;;  %v404_v26 = vld [vmem:[#allocation7 + $0x188] sm:$0xff] }
 0x149   :  { %687 = vmatpush1.bf16.msra.mxu1 %v465_v14  ;;  %647 = vmatprep.subr.bf16.mxu0 %v476_v15  ;;  %v273_v57 = vrot.slane %v265_v38, 4  ;;  %v279_v58 = vrot.slane %v266_v39, 4  ;;  %v285_v59 = vrot.slane %v267_v44, 4  ;;  %v291_v60 = vrot.slane %v268_v45, 4  ;;  %v418_v31 = vld [vmem:[#allocation7 + $0x1f8] sm:$0xff] }
 0x14a   :  { %688 = vmatprep.subr.bf16.mxu1 %v478_v17  ;;  %v297_v61 = vrot.slane %v269_v46, 4  ;;  %v303_v63 = vrot.slane %v270_v51, 4  ;;  %v309_v0 = vrot.slane %v271_v52, 4  ;;  %v315_v1 = vrot.slane %v272_v53, 4 }
 0x14b   :  { %v274_v62 = vadd.f32 %v273_v57, %v265_v38  ;;  %v280_v2 = vadd.f32 %v279_v58, %v266_v39  ;;  %v286_v3 = vadd.f32 %v285_v59, %v267_v44  ;;  %v292_v4 = vadd.f32 %v291_v60, %v268_v45  ;;  %v406_v39 = vld [vmem:[#allocation7 + $0x198] sm:$0xff] }
 0x14c   :  { %648 = vmatpush1.bf16.msra.mxu0 %v475_v19  ;;  %v298_v5 = vadd.f32 %v297_v61, %v269_v46  ;;  %v304_v7 = vadd.f32 %v303_v63, %v270_v51  ;;  %v310_v8 = vadd.f32 %v309_v0, %v271_v52  ;;  %v316_v9 = vadd.f32 %v315_v1, %v272_v53 }
 0x14d   :  { %689 = vmatpush1.bf16.msra.mxu1 %v477_v20  ;;  %649 = vmatprep.subr.bf16.mxu0 %v488_v21  ;;  %v275_v6 = vrot.slane %v274_v62, 2  ;;  %v281_v10 = vrot.slane %v280_v2, 2  ;;  %v287_v11 = vrot.slane %v286_v3, 2  ;;  %v293_v12 = vrot.slane %v292_v4, 2 }
 0x14e   :  { %690 = vmatprep.subr.bf16.mxu1 %v490_v23  ;;  %v299_v13 = vrot.slane %v298_v5, 2  ;;  %v305_v15 = vrot.slane %v304_v7, 2  ;;  %v311_v16 = vrot.slane %v310_v8, 2  ;;  %v317_v17 = vrot.slane %v316_v9, 2 }
 0x14f   :  { %v276_v14 = vadd.f32 %v275_v6, %v274_v62  ;;  %v282_v18 = vadd.f32 %v281_v10, %v280_v2  ;;  %v288_v19 = vadd.f32 %v287_v11, %v286_v3  ;;  %v294_v20 = vadd.f32 %v293_v12, %v292_v4  ;;  %v416_v2 = vld [vmem:[#allocation7 + $0x1e8] sm:$0xff]  ;;  %v415_v6 = vld [vmem:[#allocation7 + $0x1e0] sm:$0xff] }
 0x150   :  { %650 = vmatpush1.bf16.msra.mxu0 %v487_v28  ;;  %v300_v21 = vadd.f32 %v299_v13, %v298_v5  ;;  %v306_v23 = vadd.f32 %v305_v15, %v304_v7  ;;  %v312_v24 = vadd.f32 %v311_v16, %v310_v8  ;;  %v318_v25 = vadd.f32 %v317_v17, %v316_v9  ;;  %v417_v9 = vld [vmem:[#allocation7 + $0x1f0] sm:$0xff]  ;;  %v428_v15 = vld [vmem:[#allocation7 + $0x248] sm:$0xff]  ;;  %v430_v16 = vld [vmem:[#allocation7 + $0x258] sm:$0xff] }
 0x151   :  { %691 = vmatpush1.bf16.msra.mxu1 %v489_v29  ;;  %651 = vmatprep.subr.bf16.mxu0 %v500_v30  ;;  %v277_v22 = vrot.slane %v276_v14, 1  ;;  %v283_v28 = vrot.slane %v282_v18, 1  ;;  %v289_v29 = vrot.slane %v288_v19, 1  ;;  %v295_v30 = vrot.slane %v294_v20, 1 }
 0x152   :  { %692 = vmatprep.subr.bf16.mxu1 %v502_v35  ;;  %v319_v38 = vrot.slane %v318_v25, 1  ;;  %v550_v59 = vunpack.c.l.s8.bf16 %v406_v39  ;;  %vm342_vm2 = vcmask 1043459   ;;  %vm344_vm3 = vcmask 1044484  }
 0x153   :  { %v278_v35 = vadd.f32 %v277_v22, %v276_v14  ;;  %v290_v44 = vadd.f32 %v289_v29, %v288_v19  ;;  %vm346_vm4 = vcmask 1045509   ;;  %vm348_vm5 = vcmask 1046534   ;;  %v429_v22 = vld [vmem:[#allocation7 + $0x250] sm:$0xff]  ;;  %v442_v29 = vld [vmem:[#allocation7 + $0x2b8] sm:$0xff] }
 0x154   :  { %652 = vmatpush1.bf16.msra.mxu0 %v499_v34  ;;  %v301_v34 = vrot.slane %v300_v21, 1  ;;  %v320_v52 = vadd.f32 %v319_v38, %v318_v25  ;;  %v562_v1 = vunpack.c.h.s8.bf16 %v406_v39  ;;  %vm350_vm6 = vcmask 1047559   ;;  %v441_v38 = vld [vmem:[#allocation7 + $0x2b0] sm:$0xff] }
 0x155   :  { %693 = vmatpush1.bf16.msra.mxu1 %v501_v36  ;;  %653 = vmatprep.subr.bf16.mxu0 %v512_v37  ;;  %v307_v36 = vrot.slane %v306_v23, 1  ;;  %v313_v37 = vrot.slane %v312_v24, 1  ;;  %v321_v51 = vmul.f32 0.125, %v278_v35  ;;  %v323_v57 = vmul.f32 0.125, %v290_v44 }
 0x156   :  { %694 = vmatprep.subr.bf16.mxu1 %v514_v41  ;;  %v284_v41 = vadd.f32 %v283_v28, %v282_v18  ;;  %v302_v45 = vadd.f32 %v301_v34, %v300_v21  ;;  %v328_v63 = vmul.f32 0.125, %v320_v52  ;;  %v574_v8 = vunpack.c.l.s8.bf16 %v418_v31  ;;  %v440_v28 = vld [vmem:[#allocation7 + $0x2a8] sm:$0xff]  ;;  %v359_v52 = vld [vmem:[#allocation7 + $0x20] sm:$0xff] }
 0x157   :  { %v314_v46 = vadd.f32 %v313_v37, %v312_v24  ;;  %v571_v11 = vunpack.c.l.s8.bf16 %v415_v6  ;;  %v573_v12 = vunpack.c.l.s8.bf16 %v417_v9  ;;  %v584_v13 = vunpack.c.h.s8.bf16 %v416_v2 }
 0x158   :  { %654 = vmatpush1.bf16.msra.mxu0 %v511_v40  ;;  %v296_v40 = vadd.f32 %v295_v30, %v294_v20  ;;  %v322_v53 = vmul.f32 0.125, %v284_v41  ;;  %v325_v60 = vmul.f32 0.125, %v302_v45  ;;  %v586_v14 = vunpack.c.h.s8.bf16 %v418_v31  ;;  %v427_v20 = vld [vmem:[#allocation7 + $0x240] sm:$0xff]  ;;  %v360_v45 = vld [vmem:[#allocation7 + $0x28] sm:$0xff] }
 0x159   :  { %695 = vmatpush1.bf16.msra.mxu1 %v513_v42  ;;  %655 = vmatprep.subr.bf16.mxu0 %v524_v43  ;;  %v548_v42 = vunpack.c.l.s8.bf16 %v404_v26  ;;  %v308_v43 = vadd.f32 %v307_v36, %v306_v23  ;;  %v583_v17 = vunpack.c.h.s8.bf16 %v415_v6  ;;  %v585_v18 = vunpack.c.h.s8.bf16 %v417_v9  ;;  %v439_v36 = vld [vmem:[#allocation7 + $0x2a0] sm:$0xff] }
 0x15a   :  { %696 = vmatprep.subr.bf16.mxu1 %v526_v48  ;;  %v403_v48 = vld [vmem:[#allocation7 + $0x180] sm:$0xff]  ;;  %v324_v58 = vmul.f32 0.125, %v296_v40  ;;  %v339_v62 = vsel %vm338_vm0, %v322_v53, %v321_v51  ;;  %v596_v19 = vunpack.c.l.s8.bf16 %v428_v15  ;;  %v598_v21 = vunpack.c.l.s8.bf16 %v430_v16 }
 0x15b   :  { %v326_v61 = vmul.f32 0.125, %v308_v43  ;;  %v547_v27 = vunpack.c.l.s8.bf16 %v403_v48  ;;  %v559_v4 = vunpack.c.h.s8.bf16 %v403_v48  ;;  %v595_v23 = vunpack.c.l.s8.bf16 %v427_v20  ;;  %v383_v6 = vld [vmem:[#allocation7 + $0xe0] sm:$0xff] }
 0x15c   :  { %656 = vmatpush1.bf16.msra.mxu0 %v523_v47  ;;  %v405_v47 = vld [vmem:[#allocation7 + $0x190] sm:$0xff]  ;;  %v597_v24 = vunpack.c.l.s8.bf16 %v429_v22  ;;  %v608_v25 = vunpack.c.h.s8.bf16 %v428_v15  ;;  %v607_v30 = vunpack.c.h.s8.bf16 %v427_v20  ;;  %v609_v34 = vunpack.c.h.s8.bf16 %v429_v22  ;;  %v398_v15 = vld [vmem:[#allocation7 + $0x158] sm:$0xff] }
 0x15d   :  { %697 = vmatpush1.bf16.msra.mxu1 %v525_v49  ;;  %657 = vmatprep.subr.bf16.mxu0 %v536_v50  ;;  %v327_v49 = vmul.f32 0.125, %v314_v46  ;;  %v341_v50 = vsel %vm340_vm1, %v323_v57, %v339_v62  ;;  %v549_v32 = vunpack.c.l.s8.bf16 %v405_v47  ;;  %v561_v33 = vunpack.c.h.s8.bf16 %v405_v47  ;;  %v329_v46 = vld [vmem:[#allocation3] sm:$0xff]  ;;  %v361_v57 = vld [vmem:[#allocation7 + $0x30] sm:$0xff]  ;;  %v372_v62 = vld [vmem:[#allocation7 + $0x88] sm:$0xff] }
 0x15e   :  { %698 = vmatprep.subr.bf16.mxu1 %v538_v55  ;;  %v560_v55 = vunpack.c.h.s8.bf16 %v404_v26  ;;  %v343_v0 = vsel %vm342_vm2, %v324_v58, %v341_v50  ;;  %v610_v26 = vunpack.c.h.s8.bf16 %v430_v16  ;;  %v620_v35 = vunpack.c.l.s8.bf16 %v440_v28 }
 0x15f   :  { %v345_v3 = vsel %vm344_vm3, %v325_v60, %v343_v0  ;;  %v622_v37 = vunpack.c.l.s8.bf16 %v442_v29  ;;  %v619_v39 = vunpack.c.l.s8.bf16 %v439_v36  ;;  %v621_v41 = vunpack.c.l.s8.bf16 %v441_v38  ;;  %v373_v0 = vld [vmem:[#allocation7 + $0x90] sm:$0xff] }
 0x160   :  { %658 = vmatpush1.bf16.msra.mxu0 %v535_v54  ;;  %v347_v54 = vsel %vm346_vm4, %v326_v61, %v345_v3  ;;  %v632_v44 = vunpack.c.h.s8.bf16 %v440_v28  ;;  %v634_v40 = vunpack.c.h.s8.bf16 %v442_v29  ;;  %v631_v43 = vunpack.c.h.s8.bf16 %v439_v36  ;;  %v408_v28 = vld [vmem:[#allocation7 + $0x1a8] sm:$0xff]  ;;  %v410_v36 = vld [vmem:[#allocation7 + $0x1b8] sm:$0xff] }
 0x161   :  { %699 = vmatpush1.bf16.msra.mxu1 %v537_v56  ;;  %659 = vmatprep.subr.bf16.mxu0 %v548_v42  ;;  %v349_v5 = vsel %vm348_vm5, %v327_v49, %v347_v54  ;;  %v572_v56 = vunpack.c.l.s8.bf16 %v416_v2  ;;  %v362_v42 = vld [vmem:[#allocation7 + $0x38] sm:$0xff]  ;;  %v633_v51 = vunpack.c.h.s8.bf16 %v441_v38  ;;  %v456_v48 = vunpack.c.l.s8.bf16 %v360_v45  ;;  %v384_v54 = vld [vmem:[#allocation7 + $0xe8] sm:$0xff] }
 0x162   :  { %700 = vmatprep.subr.bf16.mxu1 %v550_v59  ;;  %v351_v7 = vsel %vm350_vm6, %v328_v63, %v349_v5  ;;  %v458_v53 = vunpack.c.l.s8.bf16 %v362_v42  ;;  %v2815_v58 = vpack.c.bf16 %v329_v46, %v329_v46  ;;  %v455_v59 = vunpack.c.l.s8.bf16 %v359_v52 }
 0x163   :  { %v2811_v10 = vpack.c.bf16 %v351_v7, %v351_v7  ;;  %v457_v47 = vunpack.c.l.s8.bf16 %v361_v57  ;;  %v468_v60 = vunpack.c.h.s8.bf16 %v360_v45  ;;  %v470_v61 = vunpack.c.h.s8.bf16 %v362_v42  ;;  %v409_v45 = vld [vmem:[#allocation7 + $0x1b0] sm:$0xff] }
 0x164   :  { %660 = vmatpush1.bf16.msra.mxu0 %v547_v27  ;;  %v374_v27 = vld [vmem:[#allocation7 + $0x98] sm:$0xff]  ;;  %v467_v49 = vunpack.c.h.s8.bf16 %v359_v52  ;;  %v469_v50 = vunpack.c.h.s8.bf16 %v361_v57  ;;  %v481_v2 = vunpack.c.l.s8.bf16 %v373_v0  ;;  %v492_v3 = vunpack.c.h.s8.bf16 %v372_v62 }
 0x165   :  { %701 = vmatpush1.bf16.msra.mxu1 %v549_v32  ;;  %661 = vmatprep.subr.bf16.mxu0 %v560_v55  ;;  %v480_v32 = vunpack.c.l.s8.bf16 %v372_v62  ;;  %v371_v55 = vld [vmem:[#allocation7 + $0x80] sm:$0xff]  ;;  %v482_v63 = vunpack.c.l.s8.bf16 %v374_v27  ;;  %v494_v31 = vunpack.c.h.s8.bf16 %v374_v27  ;;  %v503_v9 = vunpack.c.l.s8.bf16 %v383_v6  ;;  %v422_v52 = vld [vmem:[#allocation7 + $0x218] sm:$0xff] }
 0x166   :  { %702 = vmatprep.subr.bf16.mxu1 %v562_v1  ;;  %675 = vmatprep.mubr.bf16.mxu0 %v2811_v10  ;;  %v479_v1 = vunpack.c.l.s8.bf16 %v371_v55  ;;  %v491_v5 = vunpack.c.h.s8.bf16 %v371_v55  ;;  %v515_v16 = vunpack.c.h.s8.bf16 %v383_v6  ;;  %v530_v20 = vunpack.c.l.s8.bf16 %v398_v15  ;;  %v434_v55 = vld [vmem:[#allocation7 + $0x278] sm:$0xff] }
 0x167   :  { %716 = vmatprep.mubr.bf16.mxu1 %v2811_v10  ;;  %v2440_v29 = vmov 0   ;;  %v564_v46 = vunpack.c.h.s8.bf16 %v408_v28  ;;  %v565_v57 = vunpack.c.h.s8.bf16 %v409_v45  ;;  %v446_v6 = vld [vmem:[#allocation7 + $0x2d8] sm:$0xff] }
 0x168   :  { %662 = vmatpush1.bf16.msra.mxu0 %v559_v4  ;;  %v386_v4 = vld [vmem:[#allocation7 + $0xf8] sm:$0xff]  ;;  %2060 = vset.pattern.permute.xlu0 %v2440_v29 }
 0x169   :  { %703 = vmatpush1.bf16.msra.mxu1 %v561_v33  ;;  %663 = vmatprep.subr.bf16.mxu0 %v572_v56  ;;  %v493_v33 = vunpack.c.h.s8.bf16 %v373_v0  ;;  %v504_v56 = vunpack.c.l.s8.bf16 %v384_v54  ;;  %v506_v7 = vunpack.c.l.s8.bf16 %v386_v4 }
 0x16a   :  { %704 = vmatprep.subr.bf16.mxu1 %v574_v8  ;;  %v385_v8 = vld [vmem:[#allocation7 + $0xf0] sm:$0xff]  ;;  %2066 = vset.pattern.permute.xlu1 %v2440_v29 }
 0x16c   :  { %664 = vmatpush1.bf16.msra.mxu0 %v571_v11  ;;  %v505_v11 = vunpack.c.l.s8.bf16 %v385_v8 }
 0x16d   :  { %705 = vmatpush1.bf16.msra.mxu1 %v573_v12  ;;  %665 = vmatprep.subr.bf16.mxu0 %v584_v13  ;;  %v516_v12 = vunpack.c.h.s8.bf16 %v384_v54  ;;  %v518_v13 = vunpack.c.h.s8.bf16 %v386_v4 }
 0x16e   :  { %706 = vmatprep.subr.bf16.mxu1 %v586_v14  ;;  %v396_v14 = vld [vmem:[#allocation7 + $0x148] sm:$0xff] }
 0x170   :  { %666 = vmatpush1.bf16.msra.mxu0 %v583_v17  ;;  %v517_v17 = vunpack.c.h.s8.bf16 %v385_v8 }
 0x171   :  { %707 = vmatpush1.bf16.msra.mxu1 %v585_v18  ;;  %667 = vmatprep.subr.bf16.mxu0 %v596_v19  ;;  %v528_v18 = vunpack.c.l.s8.bf16 %v396_v14  ;;  %v395_v19 = vld [vmem:[#allocation7 + $0x140] sm:$0xff] }
 0x172   :  { %708 = vmatprep.subr.bf16.mxu1 %v598_v21  ;;  %v397_v21 = vld [vmem:[#allocation7 + $0x150] sm:$0xff]  ;;  %v527_v22 = vunpack.c.l.s8.bf16 %v395_v19  ;;  %v539_v38 = vunpack.c.h.s8.bf16 %v395_v19  ;;  %v366_v19 = vld [vmem:[#allocation7 + $0x58] sm:$0xff] }
 0x174   :  { %668 = vmatpush1.bf16.msra.mxu0 %v595_v23  ;;  %v2824_v23 = vld [vmem:[%s3044_s14] sm:$0xff] }
 0x175   :  { %709 = vmatpush1.bf16.msra.mxu1 %v597_v24  ;;  %669 = vmatprep.subr.bf16.mxu0 %v608_v25  ;;  %v529_v24 = vunpack.c.l.s8.bf16 %v397_v21  ;;  %v540_v25 = vunpack.c.h.s8.bf16 %v396_v14  ;;  %vm1341_vm7 = vcmp.eq.s32.totalorder %v2824_v23, 0  ;;  %vm1351_vm8 = vcmp.eq.s32.totalorder %v2824_v23, 1 }
 0x176   :  { %710 = vmatprep.subr.bf16.mxu1 %v610_v26  ;;  %v542_v26 = vunpack.c.h.s8.bf16 %v398_v15  ;;  %vm1363_vm9 = vcmp.eq.s32.totalorder %v2824_v23, 2  ;;  %vm1375_vm10 = vcmp.eq.s32.totalorder %v2824_v23, 3 }
 0x178   :  { %670 = vmatpush1.bf16.msra.mxu0 %v607_v30  ;;  %v2441_v30 = vmov 0.0  }
 0x179   :  { %711 = vmatpush1.bf16.msra.mxu1 %v609_v34  ;;  %671 = vmatprep.subr.bf16.mxu0 %v620_v35  ;;  %v1973_v34 = vsel %vm1341_vm7, 1.0, %v2441_v30  ;;  %v1974_v35 = vsel %vm1351_vm8, 1.0, %v2441_v30 }
 0x17a   :  { %712 = vmatprep.subr.bf16.mxu1 %v622_v37  ;;  %v2061_v37 = vpack.i.bf16 %v1974_v35, %v1973_v34  ;;  %v474_v35 = vunpack.c.h.s8.bf16 %v366_v19 }
 0x17c   :  { %672 = vmatpush1.bf16.msra.mxu0 %v619_v39  ;;  %v541_v39 = vunpack.c.h.s8.bf16 %v397_v21  ;;  %2062 = vperm.xlu0 %2060, %v2061_v37   ;;  %v378_v37 = vld [vmem:[#allocation7 + $0xb8] sm:$0xff] }
 0x17d   :  { %713 = vmatpush1.bf16.msra.mxu1 %v621_v41  ;;  %673 = vmatprep.subr.bf16.mxu0 %v632_v44  ;;  %v552_v41 = vunpack.c.l.s8.bf16 %v408_v28  ;;  %v407_v44 = vld [vmem:[#allocation7 + $0x1a0] sm:$0xff] }
 0x17e   :  { %714 = vmatprep.subr.bf16.mxu1 %v634_v40  ;;  %v554_v40 = vunpack.c.l.s8.bf16 %v410_v36  ;;  %v551_v42 = vunpack.c.l.s8.bf16 %v407_v44 }
 0x180   :  { %674 = vmatpush1.bf16.msra.mxu0 %v631_v43  ;;  %v553_v43 = vunpack.c.l.s8.bf16 %v409_v45  ;;  %v377_v45 = vld [vmem:[#allocation7 + $0xb0] sm:$0xff] }
 0x181   :  { %715 = vmatpush1.bf16.msra.mxu1 %v633_v51  ;;  %725 = vmatprep.subr.bf16.mxu0 %v456_v48  ;;  %v566_v51 = vunpack.c.h.s8.bf16 %v410_v36  ;;  %v420_v48 = vld [vmem:[#allocation7 + $0x208] sm:$0xff] }
 0x182   :  { %766 = vmatprep.subr.bf16.mxu1 %v458_v53  ;;  %v563_v53 = vunpack.c.h.s8.bf16 %v407_v44  ;;  %v376_v36 = vld [vmem:[#allocation7 + $0xa8] sm:$0xff]  ;;  %v375_v44 = vld [vmem:[#allocation7 + $0xa0] sm:$0xff] }
 0x183   :  { %676 = vmatmul.mubr.bf16.vlgmr.msra.gmra.mrb[0].mxu0 %v2815_v58 }
 0x184   :  { %726 = vmatpush1.bf16.msra.mxu0 %v455_v59  ;;  %717 = vmatmul.mubr.bf16.vlgmr.msra.gmra.mrb[0].mxu1 %v2815_v58  ;;  %v576_v59 = vunpack.c.l.s8.bf16 %v420_v48 }
 0x185   :  { %767 = vmatpush1.bf16.msra.mxu1 %v457_v47  ;;  %727 = vmatprep.subr.bf16.mxu0 %v468_v60  ;;  %v419_v47 = vld [vmem:[#allocation7 + $0x200] sm:$0xff]  ;;  %v578_v60 = vunpack.c.l.s8.bf16 %v422_v52 }
 0x186   :  { %768 = vmatprep.subr.bf16.mxu1 %v470_v61  ;;  %757 = vmatprep.mubr.bf16.mxu0 %v2811_v10  ;;  %v421_v61 = vld [vmem:[#allocation7 + $0x210] sm:$0xff]  ;;  %v575_v62 = vunpack.c.l.s8.bf16 %v419_v47 }
 0x187   :  { %798 = vmatprep.mubr.bf16.mxu1 %v2811_v10  ;;  %v577_v27 = vunpack.c.l.s8.bf16 %v421_v61  ;;  %v589_v0 = vunpack.c.h.s8.bf16 %v421_v61 }
 0x188   :  { %728 = vmatpush1.bf16.msra.mxu0 %v467_v49  ;;  %v588_v49 = vunpack.c.h.s8.bf16 %v420_v48  ;;  %v388_v48 = vld [vmem:[#allocation7 + $0x108] sm:$0xff] }
 0x189   :  { %769 = vmatpush1.bf16.msra.mxu1 %v469_v50  ;;  %729 = vmatprep.subr.bf16.mxu0 %v480_v32  ;;  %v590_v50 = vunpack.c.h.s8.bf16 %v422_v52  ;;  %v432_v32 = vld [vmem:[#allocation7 + $0x268] sm:$0xff]  ;;  %v390_v52 = vld [vmem:[#allocation7 + $0x118] sm:$0xff] }
 0x18a   :  { %770 = vmatprep.subr.bf16.mxu1 %v482_v63  ;;  %v587_v63 = vunpack.c.h.s8.bf16 %v419_v47  ;;  %v387_v47 = vld [vmem:[#allocation7 + $0x100] sm:$0xff] }
 0x18b   :  { %v507_v61 = vunpack.c.l.s8.bf16 %v387_v47 }
 0x18c   :  { %730 = vmatpush1.bf16.msra.mxu0 %v479_v1  ;;  %v600_v1 = vunpack.c.l.s8.bf16 %v432_v32 }
 0x18d   :  { %771 = vmatpush1.bf16.msra.mxu1 %v481_v2  ;;  %731 = vmatprep.subr.bf16.mxu0 %v492_v3  ;;  %v431_v2 = vld [vmem:[#allocation7 + $0x260] sm:$0xff]  ;;  %v602_v3 = vunpack.c.l.s8.bf16 %v434_v55 }
 0x18e   :  { %772 = vmatprep.subr.bf16.mxu1 %v494_v31  ;;  %v433_v31 = vld [vmem:[#allocation7 + $0x270] sm:$0xff]  ;;  %v599_v54 = vunpack.c.l.s8.bf16 %v431_v2 }
 0x18f   :  { %v601_v4 = vunpack.c.l.s8.bf16 %v433_v31  ;;  %v613_v8 = vunpack.c.h.s8.bf16 %v433_v31 }
 0x190   :  { %732 = vmatpush1.bf16.msra.mxu0 %v491_v5  ;;  %v612_v5 = vunpack.c.h.s8.bf16 %v432_v32  ;;  %v402_v32 = vld [vmem:[#allocation7 + $0x178] sm:$0xff] }
 0x191   :  { %773 = vmatpush1.bf16.msra.mxu1 %v493_v33  ;;  %733 = vmatprep.subr.bf16.mxu0 %v504_v56  ;;  %v614_v33 = vunpack.c.h.s8.bf16 %v434_v55  ;;  %v444_v56 = vld [vmem:[#allocation7 + $0x2c8] sm:$0xff]  ;;  %v519_v55 = vunpack.c.h.s8.bf16 %v387_v47 }
 0x192   :  { %774 = vmatprep.subr.bf16.mxu1 %v506_v7  ;;  %v611_v7 = vunpack.c.h.s8.bf16 %v431_v2  ;;  %v534_v2 = vunpack.c.l.s8.bf16 %v402_v32 }
 0x194   :  { %734 = vmatpush1.bf16.msra.mxu0 %v503_v9  ;;  %v624_v9 = vunpack.c.l.s8.bf16 %v444_v56 }
 0x195   :  { %775 = vmatpush1.bf16.msra.mxu1 %v505_v11  ;;  %735 = vmatprep.subr.bf16.mxu0 %v516_v12  ;;  %v443_v11 = vld [vmem:[#allocation7 + $0x2c0] sm:$0xff]  ;;  %v626_v12 = vunpack.c.l.s8.bf16 %v446_v6 }
 0x196   :  { %776 = vmatprep.subr.bf16.mxu1 %v518_v13  ;;  %v445_v13 = vld [vmem:[#allocation7 + $0x2d0] sm:$0xff]  ;;  %v623_v14 = vunpack.c.l.s8.bf16 %v443_v11 }
 0x197   :  { %v625_v15 = vunpack.c.l.s8.bf16 %v445_v13  ;;  %v637_v21 = vunpack.c.h.s8.bf16 %v445_v13 }
 0x198   :  { %736 = vmatpush1.bf16.msra.mxu0 %v515_v16  ;;  %v636_v16 = vunpack.c.h.s8.bf16 %v444_v56  ;;  %v1975_v56 = vsel %vm1363_vm9, 1.0, %v2441_v30 }
 0x199   :  { %777 = vmatpush1.bf16.msra.mxu1 %v517_v17  ;;  %737 = vmatprep.subr.bf16.mxu0 %v528_v18  ;;  %v638_v17 = vunpack.c.h.s8.bf16 %v446_v6  ;;  %v364_v18 = vld [vmem:[#allocation7 + $0x48] sm:$0xff]  ;;  %v414_v6 = vld [vmem:[#allocation7 + $0x1d8] sm:$0xff] }
 0x19a   :  { %778 = vmatprep.subr.bf16.mxu1 %v530_v20  ;;  %v635_v20 = vunpack.c.h.s8.bf16 %v443_v11  ;;  %v472_v34 = vunpack.c.h.s8.bf16 %v364_v18  ;;  %1368 = vperm.xlu0 %2060, %v1975_v56   ;;  %v558_v13 = vunpack.c.l.s8.bf16 %v414_v6  ;;  %v570_v23 = vunpack.c.h.s8.bf16 %v414_v6 }
 0x19c   :  { %738 = vmatpush1.bf16.msra.mxu0 %v527_v22  ;;  %v460_v22 = vunpack.c.l.s8.bf16 %v364_v18  ;;  %v424_v18 = vld [vmem:[#allocation7 + $0x228] sm:$0xff] }
 0x19d   :  { %779 = vmatpush1.bf16.msra.mxu1 %v529_v24  ;;  %739 = vmatprep.subr.bf16.mxu0 %v540_v25  ;;  %v363_v24 = vld [vmem:[#allocation7 + $0x40] sm:$0xff]  ;;  %v462_v25 = vunpack.c.l.s8.bf16 %v366_v19  ;;  %v426_v19 = vld [vmem:[#allocation7 + $0x238] sm:$0xff] }
 0x19e   :  { %780 = vmatprep.subr.bf16.mxu1 %v542_v26  ;;  %v365_v26 = vld [vmem:[#allocation7 + $0x50] sm:$0xff]  ;;  %v459_v28 = vunpack.c.l.s8.bf16 %v363_v24 }
 0x19f   :  { %v461_v29 = vunpack.c.l.s8.bf16 %v365_v26 }
 0x1a0   :  { %740 = vmatpush1.bf16.msra.mxu0 %v539_v38  ;;  %v471_v38 = vunpack.c.h.s8.bf16 %v363_v24  ;;  %v582_v24 = vunpack.c.l.s8.bf16 %v426_v19 }
 0x1a1   :  { %781 = vmatpush1.bf16.msra.mxu1 %v541_v39  ;;  %741 = vmatprep.subr.bf16.mxu0 %v552_v41  ;;  %v473_v39 = vunpack.c.h.s8.bf16 %v365_v26  ;;  %v484_v41 = vunpack.c.l.s8.bf16 %v376_v36 }
 0x1a2   :  { %782 = vmatprep.subr.bf16.mxu1 %v554_v40  ;;  %v486_v40 = vunpack.c.l.s8.bf16 %v378_v37 }
 0x1a4   :  { %742 = vmatpush1.bf16.msra.mxu0 %v551_v42  ;;  %v483_v42 = vunpack.c.l.s8.bf16 %v375_v44 }
 0x1a5   :  { %783 = vmatpush1.bf16.msra.mxu1 %v553_v43  ;;  %743 = vmatprep.subr.bf16.mxu0 %v564_v46  ;;  %v485_v43 = vunpack.c.l.s8.bf16 %v377_v45  ;;  %v496_v46 = vunpack.c.h.s8.bf16 %v376_v36  ;;  %v438_v36 = vld [vmem:[#allocation7 + $0x298] sm:$0xff] }
 0x1a6   :  { %784 = vmatprep.subr.bf16.mxu1 %v566_v51  ;;  %v498_v51 = vunpack.c.h.s8.bf16 %v378_v37 }
 0x1a8   :  { %744 = vmatpush1.bf16.msra.mxu0 %v563_v53  ;;  %v495_v53 = vunpack.c.h.s8.bf16 %v375_v44  ;;  %v606_v44 = vunpack.c.l.s8.bf16 %v438_v36 }
 0x1a9   :  { %785 = vmatpush1.bf16.msra.mxu1 %v565_v57  ;;  %745 = vmatprep.subr.bf16.mxu0 %v576_v59  ;;  %v497_v57 = vunpack.c.h.s8.bf16 %v377_v45  ;;  %v508_v59 = vunpack.c.l.s8.bf16 %v388_v48 }
 0x1aa   :  { %786 = vmatprep.subr.bf16.mxu1 %v578_v60  ;;  %v510_v60 = vunpack.c.l.s8.bf16 %v390_v52 }
 0x1ac   :  { %746 = vmatpush1.bf16.msra.mxu0 %v575_v62 }
 0x1ad   :  { %787 = vmatpush1.bf16.msra.mxu1 %v577_v27  ;;  %747 = vmatprep.subr.bf16.mxu0 %v588_v49  ;;  %v520_v27 = vunpack.c.h.s8.bf16 %v388_v48  ;;  %v522_v49 = vunpack.c.h.s8.bf16 %v390_v52  ;;  %v450_v48 = vld [vmem:[#allocation7 + $0x2f8] sm:$0xff] }
 0x1ae   :  { %788 = vmatprep.subr.bf16.mxu1 %v590_v50  ;;  %v400_v50 = vld [vmem:[#allocation7 + $0x168] sm:$0xff]  ;;  %v630_v47 = vunpack.c.l.s8.bf16 %v450_v48 }
 0x1b0   :  { %748 = vmatpush1.bf16.msra.mxu0 %v587_v63 }
 0x1b1   :  { %789 = vmatpush1.bf16.msra.mxu1 %v589_v0  ;;  %749 = vmatprep.subr.bf16.mxu0 %v600_v1  ;;  %v532_v0 = vunpack.c.l.s8.bf16 %v400_v50  ;;  %v399_v1 = vld [vmem:[#allocation7 + $0x160] sm:$0xff] }
 0x1b2   :  { %790 = vmatprep.subr.bf16.mxu1 %v602_v3  ;;  %v401_v3 = vld [vmem:[#allocation7 + $0x170] sm:$0xff]  ;;  %v531_v31 = vunpack.c.l.s8.bf16 %v399_v1 }
 0x1b4   :  { %750 = vmatpush1.bf16.msra.mxu0 %v599_v54  ;;  %v533_v54 = vunpack.c.l.s8.bf16 %v401_v3 }
 0x1b5   :  { %791 = vmatpush1.bf16.msra.mxu1 %v601_v4  ;;  %751 = vmatprep.subr.bf16.mxu0 %v612_v5  ;;  %v544_v4 = vunpack.c.h.s8.bf16 %v400_v50  ;;  %v546_v5 = vunpack.c.h.s8.bf16 %v402_v32 }
 0x1b6   :  { %792 = vmatprep.subr.bf16.mxu1 %v614_v33  ;;  %v412_v33 = vld [vmem:[#allocation7 + $0x1c8] sm:$0xff] }
 0x1b7   :  { %v556_v11 = vunpack.c.l.s8.bf16 %v412_v33 }
 0x1b8   :  { %752 = vmatpush1.bf16.msra.mxu0 %v611_v7  ;;  %v543_v7 = vunpack.c.h.s8.bf16 %v399_v1 }
 0x1b9   :  { %793 = vmatpush1.bf16.msra.mxu1 %v613_v8  ;;  %753 = vmatprep.subr.bf16.mxu0 %v624_v9  ;;  %v1976_v8 = vsel %vm1375_vm10, 1.0, %v2441_v30  ;;  %v545_v9 = vunpack.c.h.s8.bf16 %v401_v3 }
 0x1ba   :  { %794 = vmatprep.subr.bf16.mxu1 %v626_v12  ;;  %v411_v12 = vld [vmem:[#allocation7 + $0x1c0] sm:$0xff]  ;;  %1380 = vperm.xlu1 %2066, %v1976_v8  }
 0x1bb   :  { %v567_v30 = vunpack.c.h.s8.bf16 %v411_v12 }
 0x1bc   :  { %754 = vmatpush1.bf16.msra.mxu0 %v623_v14  ;;  %v413_v14 = vld [vmem:[#allocation7 + $0x1d0] sm:$0xff] }
 0x1bd   :  { %795 = vmatpush1.bf16.msra.mxu1 %v625_v15  ;;  %755 = vmatprep.subr.bf16.mxu0 %v636_v16  ;;  %v555_v15 = vunpack.c.l.s8.bf16 %v411_v12  ;;  %v557_v16 = vunpack.c.l.s8.bf16 %v413_v14 }
 0x1be   :  { %796 = vmatprep.subr.bf16.mxu1 %v638_v17  ;;  %v568_v17 = vunpack.c.h.s8.bf16 %v412_v33  ;;  %v1054_v33 = vld [vmem:[#allocation10 + $0x28] sm:$0xff] }
 0x1bf   :  { %v1090_v6 = vunpack.c.l.s8.bf16 %v1054_v33 }
 0x1c0   :  { %756 = vmatpush1.bf16.msra.mxu0 %v635_v20  ;;  %v569_v20 = vunpack.c.h.s8.bf16 %v413_v14 }
 0x1c1   :  { %797 = vmatpush1.bf16.msra.mxu1 %v637_v21  ;;  %807 = vmatprep.subr.bf16.mxu0 %v460_v22  ;;  %v580_v21 = vunpack.c.l.s8.bf16 %v424_v18  ;;  %v423_v22 = vld [vmem:[#allocation7 + $0x220] sm:$0xff] }
 0x1c2   :  { %848 = vmatprep.subr.bf16.mxu1 %v462_v25  ;;  %v425_v25 = vld [vmem:[#allocation7 + $0x230] sm:$0xff]  ;;  %v579_v26 = vunpack.c.l.s8.bf16 %v423_v22  ;;  %v591_v37 = vunpack.c.h.s8.bf16 %v423_v22 }
 0x1c3   :  { %758 = vmatmul.mubr.bf16.vlgmr.msra.gmra.mrb[4].mxu0 %v2815_v58 }
 0x1c4   :  { %808 = vmatpush1.bf16.msra.mxu0 %v459_v28  ;;  %799 = vmatmul.mubr.bf16.vlgmr.msra.gmra.mrb[4].mxu1 %v2815_v58  ;;  %v581_v28 = vunpack.c.l.s8.bf16 %v425_v25 }
 0x1c5   :  { %849 = vmatpush1.bf16.msra.mxu1 %v461_v29  ;;  %809 = vmatprep.subr.bf16.mxu0 %v472_v34  ;;  %v592_v29 = vunpack.c.h.s8.bf16 %v424_v18  ;;  %v594_v34 = vunpack.c.h.s8.bf16 %v426_v19  ;;  %v1057_v18 = vld [vmem:[#allocation10 + $0x40] sm:$0xff] }
 0x1c6   :  { %850 = vmatprep.subr.bf16.mxu1 %v474_v35  ;;  %839 = vmatprep.mubr.bf16.mxu0 %v2811_v10  ;;  %v436_v35 = vld [vmem:[#allocation7 + $0x288] sm:$0xff]  ;;  %v1097_v19 = vunpack.c.l.s8.bf16 %v1057_v18 }
 0x1c7   :  { %880 = vmatprep.mubr.bf16.mxu1 %v2811_v10  ;;  %v389_v10 = vld [vmem:[#allocation7 + $0x110] sm:$0xff] }
 0x1c8   :  { %810 = vmatpush1.bf16.msra.mxu0 %v471_v38  ;;  %v509_v62 = vunpack.c.l.s8.bf16 %v389_v10  ;;  %v521_v63 = vunpack.c.h.s8.bf16 %v389_v10  ;;  %v593_v38 = vunpack.c.h.s8.bf16 %v425_v25 }
 0x1c9   :  { %851 = vmatpush1.bf16.msra.mxu1 %v473_v39  ;;  %811 = vmatprep.subr.bf16.mxu0 %v484_v41  ;;  %v604_v39 = vunpack.c.l.s8.bf16 %v436_v35  ;;  %v435_v41 = vld [vmem:[#allocation7 + $0x280] sm:$0xff] }
 0x1ca   :  { %852 = vmatprep.subr.bf16.mxu1 %v486_v40  ;;  %v437_v40 = vld [vmem:[#allocation7 + $0x290] sm:$0xff]  ;;  %v603_v45 = vunpack.c.l.s8.bf16 %v435_v41  ;;  %v615_v52 = vunpack.c.h.s8.bf16 %v435_v41 }
 0x1cc   :  { %812 = vmatpush1.bf16.msra.mxu0 %v483_v42  ;;  %v605_v42 = vunpack.c.l.s8.bf16 %v437_v40 }
 0x1cd   :  { %853 = vmatpush1.bf16.msra.mxu1 %v485_v43  ;;  %813 = vmatprep.subr.bf16.mxu0 %v496_v46  ;;  %v616_v43 = vunpack.c.h.s8.bf16 %v436_v35  ;;  %v618_v46 = vunpack.c.h.s8.bf16 %v438_v36  ;;  %v1061_v35 = vld [vmem:[#allocation10 + $0x60] sm:$0xff] }
 0x1ce   :  { %854 = vmatprep.subr.bf16.mxu1 %v498_v51  ;;  %v448_v51 = vld [vmem:[#allocation7 + $0x2e8] sm:$0xff]  ;;  %v1105_v36 = vunpack.c.l.s8.bf16 %v1061_v35 }
 0x1d0   :  { %814 = vmatpush1.bf16.msra.mxu0 %v495_v53  ;;  %v617_v53 = vunpack.c.h.s8.bf16 %v437_v40 }
 0x1d1   :  { %855 = vmatpush1.bf16.msra.mxu1 %v497_v57  ;;  %815 = vmatprep.subr.bf16.mxu0 %v508_v59  ;;  %v628_v57 = vunpack.c.l.s8.bf16 %v448_v51  ;;  %v447_v59 = vld [vmem:[#allocation7 + $0x2e0] sm:$0xff] }
 0x1d2   :  { %856 = vmatprep.subr.bf16.mxu1 %v510_v60  ;;  %v449_v60 = vld [vmem:[#allocation7 + $0x2f0] sm:$0xff]  ;;  %v627_v10 = vunpack.c.l.s8.bf16 %v447_v59  ;;  %v639_v50 = vunpack.c.h.s8.bf16 %v447_v59 }
 0x1d3   :  { %v641_v32 = vunpack.c.h.s8.bf16 %v449_v60 }
 0x1d4   :  { %816 = vmatpush1.bf16.msra.mxu0 %v507_v61  ;;  %v629_v61 = vunpack.c.l.s8.bf16 %v449_v60 }
 0x1d5   :  { %857 = vmatpush1.bf16.msra.mxu1 %v509_v62  ;;  %817 = vmatprep.subr.bf16.mxu0 %v520_v27  ;;  %v640_v62 = vunpack.c.h.s8.bf16 %v448_v51  ;;  %v642_v27 = vunpack.c.h.s8.bf16 %v450_v48  ;;  %v893_v51 = vlaneseq }
 0x1d6   :  { %858 = vmatprep.subr.bf16.mxu1 %v522_v49  ;;  %v1050_v49 = vld [vmem:[#allocation10 + $0x8] sm:$0xff] }
 0x1d7   :  { %v1084_v1 = vunpack.c.h.s8.bf16 %v1050_v49  ;;  %v2840_v48 = vshrl.u32 %v893_v51, 7 }
 0x1d8   :  { %818 = vmatpush1.bf16.msra.mxu0 %v519_v55  ;;  %v1082_v55 = vunpack.c.l.s8.bf16 %v1050_v49 }
 0x1d9   :  { %859 = vmatpush1.bf16.msra.mxu1 %v521_v63  ;;  %819 = vmatprep.subr.bf16.mxu0 %v532_v0  ;;  %v1049_v63 = vld [vmem:[#allocation10] sm:$0xff]  ;;  %v2854_v59 = vsub.s32 3, %v2840_v48 }
 0x1da   :  { %860 = vmatprep.subr.bf16.mxu1 %v534_v2  ;;  %v1081_v0 = vunpack.c.l.s8.bf16 %v1049_v63  ;;  %v1052_v2 = vld [vmem:[#allocation10 + $0x18] sm:$0xff]  ;;  %v1083_v3 = vunpack.c.h.s8.bf16 %v1049_v63 }
 0x1dc   :  { %820 = vmatpush1.bf16.msra.mxu0 %v531_v31  ;;  %v1086_v31 = vunpack.c.l.s8.bf16 %v1052_v2 }
 0x1dd   :  { %861 = vmatpush1.bf16.msra.mxu1 %v533_v54  ;;  %821 = vmatprep.subr.bf16.mxu0 %v544_v4  ;;  %v1051_v54 = vld [vmem:[#allocation10 + $0x10] sm:$0xff] }
 0x1de   :  { %862 = vmatprep.subr.bf16.mxu1 %v546_v5  ;;  %v1085_v4 = vunpack.c.l.s8.bf16 %v1051_v54  ;;  %v1088_v5 = vunpack.c.h.s8.bf16 %v1052_v2  ;;  %v1087_v56 = vunpack.c.h.s8.bf16 %v1051_v54 }
 0x1e0   :  { %822 = vmatpush1.bf16.msra.mxu0 %v543_v7  ;;  %v1053_v7 = vld [vmem:[#allocation10 + $0x20] sm:$0xff] }
 0x1e1   :  { %863 = vmatpush1.bf16.msra.mxu1 %v545_v9  ;;  %823 = vmatprep.subr.bf16.mxu0 %v556_v11  ;;  %v1089_v8 = vunpack.c.l.s8.bf16 %v1053_v7  ;;  %v1092_v9 = vunpack.c.h.s8.bf16 %v1054_v33  ;;  %v1091_v11 = vunpack.c.h.s8.bf16 %v1053_v7 }
 0x1e2   :  { %864 = vmatprep.subr.bf16.mxu1 %v558_v13  ;;  %v1055_v13 = vld [vmem:[#allocation10 + $0x30] sm:$0xff] }
 0x1e3   :  { %v1093_v14 = vunpack.c.l.s8.bf16 %v1055_v13 }
 0x1e4   :  { %824 = vmatpush1.bf16.msra.mxu0 %v555_v15 }
 0x1e5   :  { %865 = vmatpush1.bf16.msra.mxu1 %v557_v16  ;;  %825 = vmatprep.subr.bf16.mxu0 %v568_v17  ;;  %v1058_v16 = vld [vmem:[#allocation10 + $0x48] sm:$0xff]  ;;  %v1095_v17 = vunpack.c.h.s8.bf16 %v1055_v13 }
 0x1e6   :  { %866 = vmatprep.subr.bf16.mxu1 %v570_v23  ;;  %v1098_v23 = vunpack.c.l.s8.bf16 %v1058_v16 }
 0x1e8   :  { %826 = vmatpush1.bf16.msra.mxu0 %v567_v30  ;;  %v1100_v30 = vunpack.c.h.s8.bf16 %v1058_v16  ;;  %v1263_v16 = vld [vmem:[#allocation14 + $0x20] sm:$0xff] }
 0x1e9   :  { %867 = vmatpush1.bf16.msra.mxu1 %v569_v20  ;;  %827 = vmatprep.subr.bf16.mxu0 %v580_v21  ;;  %v1060_v20 = vld [vmem:[#allocation10 + $0x58] sm:$0xff]  ;;  %v1099_v21 = vunpack.c.h.s8.bf16 %v1057_v18  ;;  %v1275_v18 = vunpack.c.l.s8.bf16 %v1263_v16 }
 0x1ea   :  { %868 = vmatprep.subr.bf16.mxu1 %v582_v24  ;;  %v1102_v22 = vunpack.c.l.s8.bf16 %v1060_v20  ;;  %v1059_v24 = vld [vmem:[#allocation10 + $0x50] sm:$0xff] }
 0x1eb   :  { %v1101_v25 = vunpack.c.l.s8.bf16 %v1059_v24 }
 0x1ec   :  { %828 = vmatpush1.bf16.msra.mxu0 %v579_v26  ;;  %v1104_v26 = vunpack.c.h.s8.bf16 %v1060_v20 }
 0x1ed   :  { %869 = vmatpush1.bf16.msra.mxu1 %v581_v28  ;;  %829 = vmatprep.subr.bf16.mxu0 %v592_v29  ;;  %v1062_v28 = vld [vmem:[#allocation10 + $0x68] sm:$0xff]  ;;  %v1103_v29 = vunpack.c.h.s8.bf16 %v1059_v24 }
 0x1ee   :  { %870 = vmatprep.subr.bf16.mxu1 %v594_v34  ;;  %v1106_v34 = vunpack.c.l.s8.bf16 %v1062_v28 }
 0x1f0   :  { %830 = vmatpush1.bf16.msra.mxu0 %v591_v37  ;;  %v1108_v37 = vunpack.c.h.s8.bf16 %v1062_v28  ;;  %v1260_v28 = vld [vmem:[#allocation14 + $0x8] sm:$0xff] }
 0x1f1   :  { %871 = vmatpush1.bf16.msra.mxu1 %v593_v38  ;;  %831 = vmatprep.subr.bf16.mxu0 %v604_v39  ;;  %v1064_v38 = vld [vmem:[#allocation10 + $0x78] sm:$0xff]  ;;  %v1107_v39 = vunpack.c.h.s8.bf16 %v1061_v35  ;;  %v1269_v35 = vunpack.c.l.s8.bf16 %v1260_v28 }
 0x1f2   :  { %872 = vmatprep.subr.bf16.mxu1 %v606_v44  ;;  %v1110_v41 = vunpack.c.l.s8.bf16 %v1064_v38  ;;  %v1063_v44 = vld [vmem:[#allocation10 + $0x70] sm:$0xff] }
 0x1f3   :  { %v1109_v40 = vunpack.c.l.s8.bf16 %v1063_v44 }
 0x1f4   :  { %832 = vmatpush1.bf16.msra.mxu0 %v603_v45  ;;  %v1112_v45 = vunpack.c.h.s8.bf16 %v1064_v38 }
 0x1f5   :  { %873 = vmatpush1.bf16.msra.mxu1 %v605_v42  ;;  %833 = vmatprep.subr.bf16.mxu0 %v616_v43  ;;  %v1066_v42 = vld [vmem:[#allocation10 + $0x88] sm:$0xff]  ;;  %v1111_v43 = vunpack.c.h.s8.bf16 %v1063_v44  ;;  %v1270_v44 = vunpack.c.h.s8.bf16 %v1260_v28 }
 0x1f6   :  { %874 = vmatprep.subr.bf16.mxu1 %v618_v46  ;;  %v1114_v46 = vunpack.c.l.s8.bf16 %v1066_v42  ;;  %v1116_v13 = vunpack.c.h.s8.bf16 %v1066_v42  ;;  %v1261_v42 = vld [vmem:[#allocation14 + $0x10] sm:$0xff] }
 0x1f7   :  { %v1271_v51 = vunpack.c.l.s8.bf16 %v1261_v42 }
 0x1f8   :  { %834 = vmatpush1.bf16.msra.mxu0 %v615_v52  ;;  %v2843_v52 = vsub.s32 0, %v2840_v48 }
 0x1f9   :  { %875 = vmatpush1.bf16.msra.mxu1 %v617_v53  ;;  %835 = vmatprep.subr.bf16.mxu0 %v628_v57  ;;  %v2848_v53 = vld [vmem:[%s3045_s30] sm:$0xff]  ;;  %v2851_v57 = vsub.s32 1, %v2840_v48 }
 0x1fa   :  { %876 = vmatprep.subr.bf16.mxu1 %v630_v47  ;;  %v2856_v47 = vld [vmem:[#allocation8] sm:$0xff]  ;;  %v896_v60 = vrot.slane %v2848_v53, %v2843_v52 }
 0x1fb   :  { %v976_v49 = vrot.slane %v2856_v47, %v2851_v57  ;;  %v984_v63 = vrot.slane %v2856_v47, %v2854_v59 }
 0x1fc   :  { %836 = vmatpush1.bf16.msra.mxu0 %v627_v10  ;;  %v900_v10 = vrot.slane %v2848_v53, %v2851_v57 }
 0x1fd   :  { %877 = vmatpush1.bf16.msra.mxu1 %v629_v61  ;;  %837 = vmatprep.subr.bf16.mxu0 %v640_v62  ;;  %v972_v61 = vrot.slane %v2856_v47, %v2843_v52  ;;  %v908_v62 = vrot.slane %v2848_v53, %v2854_v59 }
 0x1fe   :  { %878 = vmatprep.subr.bf16.mxu1 %v642_v27 }
 0x200   :  { %838 = vmatpush1.bf16.msra.mxu0 %v639_v50 }
 0x201   :  { %879 = vmatpush1.bf16.msra.mxu1 %v641_v32  ;;  %1145 = vmatprep.subr.bf16.mxu0 %v1082_v55 }
 0x202   :  { %1983 = vmatprep.subr.bf16.mxu1 %v1275_v18 }
 0x203   :  { %840 = vmatmul.mubr.bf16.vlgmr.msra.gmra.mrb[8].mxu0 %v2815_v58 }
 0x204   :  { %881 = vmatmul.mubr.bf16.vlgmr.msra.gmra.mrb[8].mxu1 %v2815_v58  ;;  %1146 = vmatpush1.bf16.msra.mxu0 %v1081_v0  ;;  %v1056_v58 = vld [vmem:[#allocation10 + $0x38] sm:$0xff] }
 0x205   :  { %1147 = vmatprep.subr.bf16.mxu0 %v1084_v1  ;;  %v1094_v12 = vunpack.c.l.s8.bf16 %v1056_v58  ;;  %v1096_v15 = vunpack.c.h.s8.bf16 %v1056_v58 }
 0x208   :  { %1148 = vmatpush1.bf16.msra.mxu0 %v1083_v3 }
 0x209   :  { %1149 = vmatprep.subr.bf16.mxu0 %v1086_v31 }
 0x20c   :  { %1150 = vmatpush1.bf16.msra.mxu0 %v1085_v4 }
 0x20d   :  { %1151 = vmatprep.subr.bf16.mxu0 %v1088_v5 }
 0x210   :  { %1152 = vmatpush1.bf16.msra.mxu0 %v1087_v56 }
 0x211   :  { %1153 = vmatprep.subr.bf16.mxu0 %v1090_v6  ;;  %v1065_v6 = vld [vmem:[#allocation10 + $0x80] sm:$0xff] }
 0x214   :  { %1154 = vmatpush1.bf16.msra.mxu0 %v1089_v8 }
 0x215   :  { %1155 = vmatprep.subr.bf16.mxu0 %v1092_v9 }
 0x218   :  { %1156 = vmatpush1.bf16.msra.mxu0 %v1091_v11  ;;  %v1113_v11 = vunpack.c.l.s8.bf16 %v1065_v6 }
 0x219   :  { %1157 = vmatprep.subr.bf16.mxu0 %v1094_v12 }
 0x21c   :  { %1158 = vmatpush1.bf16.msra.mxu0 %v1093_v14 }
 0x21d   :  { %1159 = vmatprep.subr.bf16.mxu0 %v1096_v15  ;;  %v1068_v15 = vld [vmem:[#allocation10 + $0x98] sm:$0xff] }
 0x21e   :  { %v1118_v20 = vunpack.c.l.s8.bf16 %v1068_v15 }
 0x220   :  { %1160 = vmatpush1.bf16.msra.mxu0 %v1095_v17  ;;  %v1259_v17 = vld [vmem:[#allocation14] sm:$0xff] }
 0x221   :  { %1161 = vmatprep.subr.bf16.mxu0 %v1098_v23  ;;  %v1115_v23 = vunpack.c.h.s8.bf16 %v1065_v6  ;;  %v1268_v24 = vunpack.c.h.s8.bf16 %v1259_v17  ;;  %v1078_v6 = vld [vmem:[#allocation10 + $0xe8] sm:$0xff] }
 0x224   :  { %1162 = vmatpush1.bf16.msra.mxu0 %v1097_v19  ;;  %v1267_v19 = vunpack.c.l.s8.bf16 %v1259_v17  ;;  %v919_v17 = vsub.s32 6, %v2840_v48 }
 0x225   :  { %1163 = vmatprep.subr.bf16.mxu0 %v1100_v30  ;;  %v1276_v30 = vunpack.c.h.s8.bf16 %v1263_v16  ;;  %v915_v16 = vsub.s32 5, %v2840_v48 }
 0x226   :  { %1984 = vmatpush3.bf16.msra.mxu1 %v1267_v19 }
 0x227   :  { %1985 = vmatprep.subr.bf16.mxu1 %v1276_v30 }
 0x228   :  { %1164 = vmatpush1.bf16.msra.mxu0 %v1099_v21  ;;  %v1067_v21 = vld [vmem:[#allocation10 + $0x90] sm:$0xff] }
 0x229   :  { %1165 = vmatprep.subr.bf16.mxu0 %v1102_v22  ;;  %v1264_v22 = vld [vmem:[#allocation14 + $0x28] sm:$0xff] }
 0x22a   :  { %1986 = vmatpush3.bf16.msra.mxu1 %v1268_v24  ;;  %v916_v24 = vrot.slane %v2848_v53, %v915_v16 }
 0x22c   :  { %1166 = vmatpush1.bf16.msra.mxu0 %v1101_v25  ;;  %v1117_v25 = vunpack.c.l.s8.bf16 %v1067_v21 }
 0x22d   :  { %1167 = vmatprep.subr.bf16.mxu0 %v1104_v26  ;;  %v1277_v26 = vunpack.c.l.s8.bf16 %v1264_v22 }
 0x22f   :  { %1987 = vmatprep.subr.bf16.mxu1 %v1277_v26  ;;  %v2063_v26 = vpop.permute.xlu0 %2062 }
 0x230   :  { %1168 = vmatpush1.bf16.msra.mxu0 %v1103_v29  ;;  %v1120_v29 = vunpack.c.h.s8.bf16 %v1068_v15  ;;  %1988 = vmatpush3.bf16.msra.mxu1 %v1269_v35  ;;  %v1080_v15 = vld [vmem:[#allocation10 + $0xf8] sm:$0xff]  ;;  %v992_v35 = vrot.slane %v2856_v47, %v915_v16 }
 0x231   :  { %1169 = vmatprep.subr.bf16.mxu0 %v1106_v34  ;;  %v1070_v34 = vld [vmem:[#allocation10 + $0xa8] sm:$0xff] }
 0x232   :  { %v1122_v38 = vunpack.c.l.s8.bf16 %v1070_v34 }
 0x234   :  { %1170 = vmatpush1.bf16.msra.mxu0 %v1105_v36  ;;  %v1119_v36 = vunpack.c.h.s8.bf16 %v1067_v21  ;;  %v1079_v21 = vld [vmem:[#allocation10 + $0xf0] sm:$0xff] }
 0x235   :  { %1171 = vmatprep.subr.bf16.mxu0 %v1108_v37  ;;  %v1278_v37 = vunpack.c.h.s8.bf16 %v1264_v22 }
 0x237   :  { %1989 = vmatprep.subr.bf16.mxu1 %v1278_v37 }
 0x238   :  { %1172 = vmatpush1.bf16.msra.mxu0 %v1107_v39  ;;  %v1069_v39 = vld [vmem:[#allocation10 + $0xa0] sm:$0xff]  ;;  %1990 = vmatpush3.bf16.msra.mxu1 %v1270_v44 }
 0x239   :  { %1173 = vmatprep.subr.bf16.mxu0 %v1110_v41  ;;  %v1265_v41 = vld [vmem:[#allocation14 + $0x30] sm:$0xff] }
 0x23c   :  { %1174 = vmatpush1.bf16.msra.mxu0 %v1109_v40  ;;  %v1121_v40 = vunpack.c.l.s8.bf16 %v1069_v39 }
 0x23d   :  { %1175 = vmatprep.subr.bf16.mxu0 %v1112_v45  ;;  %v1279_v45 = vunpack.c.l.s8.bf16 %v1265_v41 }
 0x23f   :  { %1991 = vmatprep.subr.bf16.mxu1 %v1279_v45 }
 0x240   :  { %1176 = vmatpush1.bf16.msra.mxu0 %v1111_v43  ;;  %v1124_v43 = vunpack.c.h.s8.bf16 %v1070_v34  ;;  %1992 = vmatpush3.bf16.msra.mxu1 %v1271_v51 }
 0x241   :  { %1186 = vmatprep.subr.bf16.mxu0 %v1114_v46  ;;  %v1072_v46 = vld [vmem:[#allocation10 + $0xb8] sm:$0xff] }
 0x256   :  { %v677_v27 = vpop.f32.mrb[0].mxu0 }
 0x257   :  { %v953_v50 = vmul.f32 %v896_v60, %v677_v27  ;;  %v679_v32 = vpop.f32.mrb[1].mxu0  ;;  %v2868_v55 = vpop.f32.mrb[0].mxu1  ;;  %v1123_v60 = vunpack.c.h.s8.bf16 %v1069_v39  ;;  %v1272_v27 = vunpack.c.h.s8.bf16 %v1261_v42 }
 0x258   :  { %v954_v0 = vmul.f32 %v900_v10, %v679_v32  ;;  %v681_v1 = vpop.f32.mrb[2].mxu0  ;;  %v720_v2 = vpop.f32.mrb[1].mxu1  ;;  %v1280_v10 = vunpack.c.h.s8.bf16 %v1265_v41  ;;  %v1074_v32 = vld [vmem:[#allocation10 + $0xc8] sm:$0xff] }
 0x259   :  { %v1029_v3 = vadd.f32 %v972_v61, %v953_v50  ;;  %v682_v31 = vpop.f32.mrb[3].mxu0  ;;  %v956_v54 = vmul.f32 %v908_v62, %v720_v2  ;;  %v722_v4 = vpop.f32.mrb[2].mxu1  ;;  %v1126_v61 = vunpack.c.l.s8.bf16 %v1072_v46  ;;  %v1071_v62 = vld [vmem:[#allocation10 + $0xb0] sm:$0xff]  ;;  %v1128_v50 = vunpack.c.h.s8.bf16 %v1072_v46  ;;  %v1073_v1 = vld [vmem:[#allocation10 + $0xc0] sm:$0xff] }
 0x25a   :  { %v1030_v5 = vadd.f32 %v976_v49, %v954_v0  ;;  %v723_v33 = vpop.f32.mrb[3].mxu1  ;;  %v1125_v49 = vunpack.c.l.s8.bf16 %v1071_v62  ;;  %1993 = vmatprep.subr.bf16.mxu1 %v1280_v10  ;;  %v1130_v0 = vunpack.c.l.s8.bf16 %v1074_v32  ;;  %v1129_v2 = vunpack.c.l.s8.bf16 %v1073_v1  ;;  %v1076_v31 = vld [vmem:[#allocation10 + $0xd8] sm:$0xff] }
 0x25b   :  { %v1041_v56 = vmax.f32 %v1029_v3, 0.0  ;;  %v1032_v7 = vadd.f32 %v984_v63, %v956_v54  ;;  %1994 = vmatpush3.bf16.msra.mxu1 %v1272_v27  ;;  %v1127_v63 = vunpack.c.h.s8.bf16 %v1071_v62  ;;  %v1132_v3 = vunpack.c.h.s8.bf16 %v1074_v32 }
 0x25c   :  { %v1042_v8 = vmax.f32 %v1030_v5, 0.0  ;;  %v1131_v54 = vunpack.c.h.s8.bf16 %v1073_v1  ;;  %v1134_v4 = vunpack.c.l.s8.bf16 %v1076_v31  ;;  %v1075_v5 = vld [vmem:[#allocation10 + $0xd0] sm:$0xff]  ;;  %v2065_v46 = vunpack.i.h.bf16 %v2063_v26 }
 0x25d   :  { %v1044_v9 = vmax.f32 %v1032_v7, 0.0  ;;  %v1045_v12 = vpack.c.bf16 %v1041_v56, %v1041_v56  ;;  %v1133_v33 = vunpack.c.l.s8.bf16 %v1075_v5  ;;  %v1136_v56 = vunpack.c.h.s8.bf16 %v1076_v31 }
 0x25e   :  { %v1046_v58 = vpack.c.bf16 %v1042_v8, %v1042_v8  ;;  %v1135_v7 = vunpack.c.h.s8.bf16 %v1075_v5  ;;  %v1138_v8 = vunpack.c.l.s8.bf16 %v1078_v6  ;;  %v1143_v62 = vunpack.c.h.s8.bf16 %v1079_v21  ;;  %v966_v5 = vld [vmem:[#allocation8 + $0x8] sm:$0xf] }
 0x25f   :  { %v1048_v14 = vpack.c.bf16 %v1044_v9, %v1044_v9  ;;  %v1077_v9 = vld [vmem:[#allocation10 + $0xe0] sm:$0xff] }
 0x260   :  { %1177 = vmatprep.mubr.bf16.mxu0 %v1046_v58  ;;  %v2873_v58 = vsub.s32 2, %v2840_v48  ;;  %v1139_v18 = vunpack.c.h.s8.bf16 %v1077_v9 }
 0x261   :  { %1178 = vmatmul.mubr.bf16.vlgmr.msra.gmra.mrb[12].mxu0 %v1045_v12 }
 0x262   :  { %1187 = vmatpush1.bf16.msra.mxu0 %v1113_v11  ;;  %1218 = vmatprep.mubr.bf16.mxu0 %v1048_v14  ;;  %v1137_v11 = vunpack.c.l.s8.bf16 %v1077_v9  ;;  %v904_v12 = vrot.slane %v2848_v53, %v2873_v58  ;;  %v911_v14 = vsub.s32 4, %v2840_v48  ;;  %v980_v30 = vrot.slane %v2856_v47, %v2873_v58  ;;  %v1369_v9 = vpop.permute.xlu0 %1368 }
 0x263   :  { %1188 = vmatprep.subr.bf16.mxu0 %v1116_v13  ;;  %v1140_v13 = vunpack.c.h.s8.bf16 %v1078_v6 }
 0x264   :  { %v955_v19 = vmul.f32 %v904_v12, %v2868_v55  ;;  %v912_v22 = vrot.slane %v2848_v53, %v911_v14  ;;  %v988_v28 = vrot.slane %v2856_v47, %v911_v14  ;;  %v1144_v55 = vunpack.c.h.s8.bf16 %v1080_v15  ;;  %v1381_v14 = vpop.permute.xlu1 %1380 }
 0x265   :  { %v1008_v12 = vrot.slane %v966_v5, %v2851_v57 }
 0x266   :  { %1189 = vmatpush1.bf16.msra.mxu0 %v1115_v23  ;;  %v923_v23 = vsub.s32 7, %v2840_v48  ;;  %v1031_v37 = vadd.f32 %v980_v30, %v955_v19 }
 0x267   :  { %1190 = vmatprep.subr.bf16.mxu0 %v1118_v20  ;;  %v1142_v20 = vunpack.c.l.s8.bf16 %v1080_v15 }
 0x268   :  { %v924_v48 = vrot.slane %v2848_v53, %v923_v23  ;;  %v1000_v44 = vrot.slane %v2856_v47, %v923_v23  ;;  %v1043_v32 = vmax.f32 %v1031_v37, 0.0  ;;  %v1016_v23 = vrot.slane %v966_v5, %v2854_v59 }
 0x26a   :  { %1191 = vmatpush1.bf16.msra.mxu0 %v1117_v25  ;;  %v920_v25 = vrot.slane %v2848_v53, %v919_v17  ;;  %v1047_v31 = vpack.c.bf16 %v1043_v32, %v1043_v32 }
 0x26b   :  { %1192 = vmatprep.subr.bf16.mxu0 %v1120_v29  ;;  %v1141_v29 = vunpack.c.l.s8.bf16 %v1079_v21 }
 0x26e   :  { %1193 = vmatpush1.bf16.msra.mxu0 %v1119_v36  ;;  %v996_v36 = vrot.slane %v2856_v47, %v919_v17 }
 0x26f   :  { %1194 = vmatprep.subr.bf16.mxu0 %v1122_v38 }
 0x272   :  { %1195 = vmatpush1.bf16.msra.mxu0 %v1121_v40  ;;  %v2064_v40 = vunpack.i.l.bf16 %v2063_v26 }
 0x273   :  { %1196 = vmatprep.subr.bf16.mxu0 %v1124_v43 }
 0x276   :  { %1197 = vmatpush1.bf16.msra.mxu0 %v1123_v60 }
 0x277   :  { %1198 = vmatprep.subr.bf16.mxu0 %v1126_v61 }
 0x27a   :  { %1199 = vmatpush1.bf16.msra.mxu0 %v1125_v49 }
 0x27b   :  { %1200 = vmatprep.subr.bf16.mxu0 %v1128_v50 }
 0x27e   :  { %1201 = vmatpush1.bf16.msra.mxu0 %v1127_v63 }
 0x27f   :  { %1202 = vmatprep.subr.bf16.mxu0 %v1130_v0 }
 0x282   :  { %1203 = vmatpush1.bf16.msra.mxu0 %v1129_v2 }
 0x283   :  { %1204 = vmatprep.subr.bf16.mxu0 %v1132_v3 }
 0x286   :  { %1205 = vmatpush1.bf16.msra.mxu0 %v1131_v54 }
 0x287   :  { %1206 = vmatprep.subr.bf16.mxu0 %v1134_v4  ;;  %v890_v4 = vld [vmem:[%s3045_s30 + $0x8] sm:$0xf]  ;;  %s3046_s30 = sld [smem:[#allocation43_spill]] }
 0x288   :  { %v936_v6 = vrot.slane %v890_v4, %v2873_v58 }
 0x28a   :  { %1207 = vmatpush1.bf16.msra.mxu0 %v1133_v33  ;;  %v928_v33 = vrot.slane %v890_v4, %v2843_v52 }
 0x28b   :  { %1208 = vmatprep.subr.bf16.mxu0 %v1136_v56  ;;  %v932_v56 = vrot.slane %v890_v4, %v2851_v57 }
 0x28e   :  { %1209 = vmatpush1.bf16.msra.mxu0 %v1135_v7  ;;  %v1004_v7 = vrot.slane %v966_v5, %v2843_v52 }
 0x28f   :  { %1210 = vmatprep.subr.bf16.mxu0 %v1138_v8  ;;  %v940_v8 = vrot.slane %v890_v4, %v2854_v59 }
 0x292   :  { %1211 = vmatpush1.bf16.msra.mxu0 %v1137_v11 }
 0x293   :  { %1212 = vmatprep.subr.bf16.mxu0 %v1140_v13  ;;  %v1012_v13 = vrot.slane %v966_v5, %v2873_v58 }
 0x296   :  { %1213 = vmatpush1.bf16.msra.mxu0 %v1139_v18  ;;  %v759_v34 = vpop.f32.mrb[4].mxu0 }
 0x297   :  { %1214 = vmatprep.subr.bf16.mxu0 %v1142_v20  ;;  %v957_v38 = vmul.f32 %v912_v22, %v759_v34  ;;  %v761_v39 = vpop.f32.mrb[5].mxu0  ;;  %v800_v41 = vpop.f32.mrb[4].mxu1 }
 0x298   :  { %v958_v45 = vmul.f32 %v916_v24, %v761_v39  ;;  %v763_v42 = vpop.f32.mrb[6].mxu0  ;;  %v959_v43 = vmul.f32 %v920_v25, %v800_v41  ;;  %v802_v53 = vpop.f32.mrb[5].mxu1 }
 0x299   :  { %v1033_v51 = vadd.f32 %v988_v28, %v957_v38  ;;  %v764_v60 = vpop.f32.mrb[7].mxu0  ;;  %v960_v10 = vmul.f32 %v924_v48, %v802_v53  ;;  %v804_v61 = vpop.f32.mrb[6].mxu1 }
 0x29a   :  { %1215 = vmatpush1.bf16.msra.mxu0 %v1141_v29  ;;  %v1034_v27 = vadd.f32 %v992_v35, %v958_v45  ;;  %v1035_v49 = vadd.f32 %v996_v36, %v959_v43  ;;  %v805_v50 = vpop.f32.mrb[7].mxu1  ;;  %v1262_v45 = vld [vmem:[#allocation14 + $0x18] sm:$0xff] }
 0x29b   :  { %1216 = vmatprep.subr.bf16.mxu0 %v1144_v55  ;;  %v1036_v63 = vadd.f32 %v1000_v44, %v960_v10  ;;  %v1349_v0 = vmul.f32 %v2064_v40, %v1033_v51  ;;  %v1266_v44 = vld [vmem:[#allocation14 + $0x38] sm:$0xff]  ;;  %v1273_v42 = vunpack.c.l.s8.bf16 %v1262_v45  ;;  %v1274_v53 = vunpack.c.h.s8.bf16 %v1262_v45 }
 0x29c   :  { %v1350_v47 = vmul.f32 %v2064_v40, %v1034_v27  ;;  %v1359_v1 = vmul.f32 %v2065_v46, %v1035_v49  ;;  %v1281_v40 = vunpack.c.l.s8.bf16 %v1266_v44  ;;  %v1282_v43 = vunpack.c.h.s8.bf16 %v1266_v44  ;;  %v1227_v60 = vld [vmem:[#allocation11] sm:$0x3]  ;;  %v1241_v10 = vld [vmem:[#allocation13] sm:$0x3] }
 0x29d   :  { %v1360_v2 = vmul.f32 %v2065_v46, %v1036_v63  ;;  %v1390_v46 = vld [vmem:[#allocation19 + $0x8] sm:$0xff]  ;;  %v1232_v61 = vrot.slane %v1227_v60, %v2843_v52  ;;  %v1246_v27 = vrot.slane %v1241_v10, %v2843_v52  ;;  %v1250_v50 = vrot.slane %v1241_v10, %v2851_v57 }
 0x29e   :  { %1217 = vmatpush1.bf16.msra.mxu0 %v1143_v62  ;;  %v1361_v3 = vadd.f32 %v1359_v1, %v1349_v0  ;;  %1995 = vmatprep.subr.bf16.mxu1 %v1281_v40  ;;  %v1422_v51 = vunpack.c.l.s8.bf16 %v1390_v46  ;;  %v1236_v62 = vrot.slane %v1227_v60, %v2851_v57  ;;  %v1414_v40 = vld [vmem:[#allocation19 + $0xc8] sm:$0xff] }
 0x29f   :  { %v1362_v54 = vadd.f32 %v1360_v2, %v1350_v47  ;;  %1996 = vmatpush3.bf16.msra.mxu1 %v1273_v42  ;;  %v1470_v42 = vunpack.c.l.s8.bf16 %v1414_v40 }
 0x2a0   :  { %1997 = vmatprep.subr.bf16.mxu1 %v1282_v43  ;;  %v1413_v43 = vld [vmem:[#allocation19 + $0xc0] sm:$0xff] }
 0x2a1   :  { %1219 = vmatmul.mubr.bf16.vlgmr.msra.gmra.mrb[12].mxu0 %v1047_v31  ;;  %v1473_v60 = vunpack.c.h.s8.bf16 %v1413_v43 }
 0x2a3   :  { %1998 = vmatpush3.bf16.msra.mxu1 %v1274_v53  ;;  %v1469_v53 = vunpack.c.l.s8.bf16 %v1413_v43 }
 0x2a4   :  { %1485 = vmatprep.subr.bf16.mxu1 %v1422_v51  ;;  %v1418_v51 = vld [vmem:[#allocation19 + $0xe8] sm:$0xff] }
 0x2a5   :  { %v1478_v10 = vunpack.c.l.s8.bf16 %v1418_v51 }
 0x2d6   :  { %v841_v11 = vpop.f32.mrb[8].mxu0 }
 0x2d7   :  { %v961_v15 = vmul.f32 %v928_v33, %v841_v11  ;;  %v843_v16 = vpop.f32.mrb[9].mxu0  ;;  %v882_v17 = vpop.f32.mrb[8].mxu1 }
 0x2d8   :  { %v962_v18 = vmul.f32 %v932_v56, %v843_v16  ;;  %v963_v19 = vmul.f32 %v936_v6, %v882_v17  ;;  %v884_v30 = vpop.f32.mrb[9].mxu1  ;;  %v845_v20 = vpop.f32.mrb[10].mxu0  ;;  %v1426_v6 = vunpack.c.h.s8.bf16 %v1390_v46  ;;  %v1474_v46 = vunpack.c.h.s8.bf16 %v1414_v40 }
 0x2d9   :  { %v1037_v21 = vadd.f32 %v1004_v7, %v961_v15  ;;  %v964_v22 = vmul.f32 %v940_v8, %v884_v30  ;;  %v846_v24 = vpop.f32.mrb[11].mxu0  ;;  %v886_v25 = vpop.f32.mrb[10].mxu1  ;;  %v1394_v8 = vld [vmem:[#allocation19 + $0x28] sm:$0xff] }
 0x2da   :  { %v1038_v26 = vadd.f32 %v1008_v12, %v962_v18  ;;  %v1039_v28 = vadd.f32 %v1012_v13, %v963_v19  ;;  %v887_v48 = vpop.f32.mrb[11].mxu1  ;;  %v1430_v11 = vunpack.c.l.s8.bf16 %v1394_v8  ;;  %v1393_v12 = vld [vmem:[#allocation19 + $0x20] sm:$0xff]  ;;  %v1398_v15 = vld [vmem:[#allocation19 + $0x48] sm:$0xff] }
 0x2db   :  { %v1040_v29 = vadd.f32 %v1016_v23, %v964_v22  ;;  %v1371_v55 = vmul.f32 %v1369_v9, %v1037_v21  ;;  %v1429_v13 = vunpack.c.l.s8.bf16 %v1393_v12  ;;  %v1433_v16 = vunpack.c.h.s8.bf16 %v1393_v12  ;;  %v1397_v23 = vld [vmem:[#allocation19 + $0x40] sm:$0xff]  ;;  %v1402_v30 = vld [vmem:[#allocation19 + $0x68] sm:$0xff] }
 0x2dc   :  { %v1372_v34 = vmul.f32 %v1369_v9, %v1038_v26  ;;  %v1383_v35 = vmul.f32 %v1381_v14, %v1039_v28  ;;  %v1438_v17 = vunpack.c.l.s8.bf16 %v1398_v15  ;;  %v1437_v18 = vunpack.c.l.s8.bf16 %v1397_v23  ;;  %v1401_v22 = vld [vmem:[#allocation19 + $0x60] sm:$0xff]  ;;  %v1406_v26 = vld [vmem:[#allocation19 + $0x88] sm:$0xff] }
 0x2dd   :  { %v1373_v36 = vadd.f32 %v1371_v55, %v1361_v3  ;;  %v1384_v37 = vmul.f32 %v1381_v14, %v1040_v29  ;;  %v1434_v14 = vunpack.c.h.s8.bf16 %v1394_v8  ;;  %v1442_v19 = vunpack.c.h.s8.bf16 %v1398_v15  ;;  %v1405_v29 = vld [vmem:[#allocation19 + $0x80] sm:$0xff] }
 0x2de   :  { %v1374_v38 = vadd.f32 %v1372_v34, %v1362_v54  ;;  %v1389_v54 = vld [vmem:[#allocation19] sm:$0xff]  ;;  %v1441_v20 = vunpack.c.h.s8.bf16 %v1397_v23  ;;  %v1446_v21 = vunpack.c.l.s8.bf16 %v1402_v30  ;;  %v1445_v24 = vunpack.c.l.s8.bf16 %v1401_v22 }
 0x2df   :  { %v2903_v39 = vadd.f32 %v1383_v35, %v1373_v36  ;;  %v1421_v33 = vunpack.c.l.s8.bf16 %v1389_v54  ;;  %v1425_v9 = vunpack.c.h.s8.bf16 %v1389_v54  ;;  %v1450_v25 = vunpack.c.h.s8.bf16 %v1402_v30  ;;  %v1410_v35 = vld [vmem:[#allocation19 + $0xa8] sm:$0xff]  ;;  %v1395_v54 = vld [vmem:[#allocation19 + $0x30] sm:$0xff] }
 0x2e0   :  { %v1386_v41 = vadd.f32 %v1384_v37, %v1374_v38  ;;  %v1449_v28 = vunpack.c.h.s8.bf16 %v1401_v22  ;;  %v1454_v48 = vunpack.c.l.s8.bf16 %v1406_v26  ;;  %v1453_v55 = vunpack.c.l.s8.bf16 %v1405_v29  ;;  %v1409_v38 = vld [vmem:[#allocation19 + $0xa0] sm:$0xff] }
 0x2e1   :  { %v1458_v34 = vunpack.c.h.s8.bf16 %v1406_v26  ;;  %v1457_v36 = vunpack.c.h.s8.bf16 %v1405_v29  ;;  %v1462_v37 = vunpack.c.l.s8.bf16 %v1410_v35  ;;  %v1466_v44 = vunpack.c.h.s8.bf16 %v1410_v35  ;;  %v1627_v23 = vld [vmem:[#allocation22] sm:$0xff]  ;;  %v1629_v29 = vld [vmem:[#allocation22 + $0x10] sm:$0xff] }
 0x2e2   :  { %v2909_v7 = vpack.c.bf16 %v1386_v41, %v1386_v41  ;;  %v1461_v41 = vunpack.c.l.s8.bf16 %v1409_v38  ;;  %v1465_v45 = vunpack.c.h.s8.bf16 %v1409_v38 }
 0x374   :  { %v1220_v49 = vpop.f32.mrb[12].mxu0 }
 0x375   :  { %v1239_v32 = vmul.f32 %v1232_v61, %v1220_v49  ;;  %v1222_v63 = vpop.f32.mrb[13].mxu0  ;;  %v1417_v61 = vld [vmem:[#allocation19 + $0xe0] sm:$0xff]  ;;  %v1392_v49 = vld [vmem:[#allocation19 + $0x18] sm:$0xff] }
 0x376   :  { %v1240_v0 = vmul.f32 %v1236_v62, %v1222_v63  ;;  %v1224_v47 = vpop.f32.mrb[14].mxu0  ;;  %v1477_v62 = vunpack.c.l.s8.bf16 %v1417_v61  ;;  %v1391_v63 = vld [vmem:[#allocation19 + $0x10] sm:$0xff] }
 0x377   :  { %v1253_v1 = vadd.f32 %v1246_v27, %v1239_v32  ;;  %v1225_v2 = vpop.f32.mrb[15].mxu0  ;;  %v1482_v27 = vunpack.c.h.s8.bf16 %v1418_v51  ;;  %v1424_v32 = vunpack.c.l.s8.bf16 %v1392_v49  ;;  %v2914_v47 = vpack.c.bf16 %v2903_v39, %v2903_v39 }
 0x378   :  { %v1254_v3 = vadd.f32 %v1250_v50, %v1240_v0  ;;  %v1481_v50 = vunpack.c.h.s8.bf16 %v1417_v61  ;;  %v1423_v0 = vunpack.c.l.s8.bf16 %v1391_v63  ;;  %v1396_v2 = vld [vmem:[#allocation19 + $0x38] sm:$0xff]  ;;  %v1435_v39 = vunpack.c.h.s8.bf16 %v1395_v54 }
 0x379   :  { %v1255_v31 = vmax.f32 %v1253_v1, 0.0  ;;  %v1428_v1 = vunpack.c.h.s8.bf16 %v1392_v49 }
 0x37a   :  { %v1256_v4 = vmax.f32 %v1254_v3, 0.0  ;;  %v1427_v3 = vunpack.c.h.s8.bf16 %v1391_v63 }
 0x37b   :  { %v1257_v56 = vpack.c.bf16 %v1255_v31, %v1255_v31  ;;  %v1432_v31 = vunpack.c.l.s8.bf16 %v1396_v2 }
 0x37c   :  { %v1258_v5 = vpack.c.bf16 %v1256_v4, %v1256_v4  ;;  %v1431_v4 = vunpack.c.l.s8.bf16 %v1395_v54 }
 0x37e   :  { %1315 = vmatprep.mubr.bf16.mxu1 %v1258_v5  ;;  %v1436_v5 = vunpack.c.h.s8.bf16 %v1396_v2 }
 0x37f   :  { %1316 = vmatmul.mubr.bf16.vlgmr.msra.gmra.mrb[12].mxu1 %v1257_v56 }
 0x380   :  { %1486 = vmatpush1.bf16.msra.mxu1 %v1421_v33  ;;  %1517 = vmatprep.mubr.bf16.mxu1 %v2909_v7  ;;  %v1400_v33 = vld [vmem:[#allocation19 + $0x58] sm:$0xff] }
 0x381   :  { %1487 = vmatprep.subr.bf16.mxu1 %v1426_v6  ;;  %v1440_v56 = vunpack.c.l.s8.bf16 %v1400_v33  ;;  %v1399_v6 = vld [vmem:[#allocation19 + $0x50] sm:$0xff] }
 0x382   :  { %v1439_v8 = vunpack.c.l.s8.bf16 %v1399_v6 }
 0x384   :  { %1488 = vmatpush1.bf16.msra.mxu1 %v1425_v9  ;;  %v1444_v9 = vunpack.c.h.s8.bf16 %v1400_v33 }
 0x385   :  { %1489 = vmatprep.subr.bf16.mxu1 %v1430_v11  ;;  %v1404_v11 = vld [vmem:[#allocation19 + $0x78] sm:$0xff] }
 0x386   :  { %v1448_v12 = vunpack.c.l.s8.bf16 %v1404_v11  ;;  %v1452_v15 = vunpack.c.h.s8.bf16 %v1404_v11 }
 0x388   :  { %1490 = vmatpush1.bf16.msra.mxu1 %v1429_v13  ;;  %v1403_v13 = vld [vmem:[#allocation19 + $0x70] sm:$0xff] }
 0x389   :  { %1491 = vmatprep.subr.bf16.mxu1 %v1434_v14  ;;  %v1447_v14 = vunpack.c.l.s8.bf16 %v1403_v13  ;;  %v1451_v30 = vunpack.c.h.s8.bf16 %v1403_v13 }
 0x38c   :  { %1492 = vmatpush1.bf16.msra.mxu1 %v1433_v16  ;;  %v1408_v16 = vld [vmem:[#allocation19 + $0x98] sm:$0xff] }
 0x38d   :  { %1493 = vmatprep.subr.bf16.mxu1 %v1438_v17  ;;  %v1628_v17 = vld [vmem:[#allocation22 + $0x8] sm:$0xff] }
 0x38e   :  { %v1662_v26 = vunpack.c.h.s8.bf16 %v1628_v17 }
 0x390   :  { %1494 = vmatpush1.bf16.msra.mxu1 %v1437_v18  ;;  %v1660_v18 = vunpack.c.l.s8.bf16 %v1628_v17  ;;  %v1640_v17 = vld [vmem:[#allocation22 + $0x68] sm:$0xff] }
 0x391   :  { %1495 = vmatprep.subr.bf16.mxu1 %v1442_v19  ;;  %v1659_v19 = vunpack.c.l.s8.bf16 %v1627_v23 }
 0x392   :  { %1723 = vmatprep.subr.bf16.mxu0 %v1660_v18  ;;  %v1684_v18 = vunpack.c.l.s8.bf16 %v1640_v17 }
 0x393   :  { %1724 = vmatpush1.bf16.msra.mxu0 %v1659_v19  ;;  %v1639_v19 = vld [vmem:[#allocation22 + $0x60] sm:$0xff] }
 0x394   :  { %1496 = vmatpush1.bf16.msra.mxu1 %v1441_v20  ;;  %v1456_v20 = vunpack.c.l.s8.bf16 %v1408_v16  ;;  %1725 = vmatprep.subr.bf16.mxu0 %v1662_v26 }
 0x395   :  { %1497 = vmatprep.subr.bf16.mxu1 %v1446_v21  ;;  %v1407_v21 = vld [vmem:[#allocation19 + $0x90] sm:$0xff] }
 0x396   :  { %v1455_v22 = vunpack.c.l.s8.bf16 %v1407_v21 }
 0x398   :  { %1498 = vmatpush1.bf16.msra.mxu1 %v1445_v24  ;;  %v1460_v24 = vunpack.c.h.s8.bf16 %v1408_v16 }
 0x399   :  { %1499 = vmatprep.subr.bf16.mxu1 %v1450_v25  ;;  %v1412_v25 = vld [vmem:[#allocation19 + $0xb8] sm:$0xff] }
 0x39a   :  { %v1464_v35 = vunpack.c.l.s8.bf16 %v1412_v25  ;;  %v1468_v40 = vunpack.c.h.s8.bf16 %v1412_v25 }
 0x39c   :  { %1500 = vmatpush1.bf16.msra.mxu1 %v1449_v28  ;;  %v1661_v28 = vunpack.c.h.s8.bf16 %v1627_v23 }
 0x39d   :  { %1501 = vmatprep.subr.bf16.mxu1 %v1454_v48  ;;  %v1630_v48 = vld [vmem:[#allocation22 + $0x18] sm:$0xff] }
 0x39e   :  { %1726 = vmatpush1.bf16.msra.mxu0 %v1661_v28  ;;  %v1666_v38 = vunpack.c.h.s8.bf16 %v1630_v48 }
 0x3a0   :  { %1502 = vmatpush1.bf16.msra.mxu1 %v1453_v55  ;;  %v1664_v55 = vunpack.c.l.s8.bf16 %v1630_v48  ;;  %v2919_v48 = vld [vmem:[#allocation22 + $0x88] sm:$0xff] }
 0x3a1   :  { %1503 = vmatprep.subr.bf16.mxu1 %v1458_v34  ;;  %v1459_v34 = vunpack.c.h.s8.bf16 %v1407_v21  ;;  %v1685_v21 = vunpack.c.h.s8.bf16 %v1639_v19 }
 0x3a2   :  { %1727 = vmatprep.subr.bf16.mxu0 %v1664_v55 }
 0x3a4   :  { %1504 = vmatpush1.bf16.msra.mxu1 %v1457_v36  ;;  %v1411_v36 = vld [vmem:[#allocation19 + $0xb0] sm:$0xff] }
 0x3a5   :  { %1505 = vmatprep.subr.bf16.mxu1 %v1462_v37  ;;  %v1663_v37 = vunpack.c.l.s8.bf16 %v1629_v29 }
 0x3a7   :  { %1728 = vmatpush1.bf16.msra.mxu0 %v1663_v37 }
 0x3a8   :  { %1506 = vmatpush1.bf16.msra.mxu1 %v1461_v41  ;;  %v1632_v41 = vld [vmem:[#allocation22 + $0x28] sm:$0xff]  ;;  %1729 = vmatprep.subr.bf16.mxu0 %v1666_v38 }
 0x3a9   :  { %1507 = vmatprep.subr.bf16.mxu1 %v1466_v44  ;;  %v1463_v44 = vunpack.c.l.s8.bf16 %v1411_v36  ;;  %v1668_v43 = vunpack.c.l.s8.bf16 %v1632_v41  ;;  %v1670_v61 = vunpack.c.h.s8.bf16 %v1632_v41  ;;  %v1972_v41 = vld [vmem:[#allocation17] ss:$0 sm:$0xff] }
 0x3ac   :  { %1508 = vmatpush1.bf16.msra.mxu1 %v1465_v45  ;;  %v1665_v45 = vunpack.c.h.s8.bf16 %v1629_v29  ;;  %v1692_v29 = vunpack.c.l.s8.bf16 %v2919_v48 }
 0x3ad   :  { %1509 = vmatprep.subr.bf16.mxu1 %v1470_v42  ;;  %v1416_v42 = vld [vmem:[#allocation19 + $0xd8] sm:$0xff] }
 0x3ae   :  { %v1472_v51 = vunpack.c.l.s8.bf16 %v1416_v42  ;;  %1730 = vmatpush1.bf16.msra.mxu0 %v1665_v45  ;;  %v1476_v49 = vunpack.c.h.s8.bf16 %v1416_v42  ;;  %v1979_v45 = vld [vmem:[%s3014_s21] ss:$0 sm:$0xff] }
 0x3af   :  { %1731 = vmatprep.subr.bf16.mxu0 %v1668_v43 }
 0x3b0   :  { %1510 = vmatpush1.bf16.msra.mxu1 %v1469_v53  ;;  %v1631_v53 = vld [vmem:[#allocation22 + $0x20] sm:$0xff] }
 0x3b1   :  { %1511 = vmatprep.subr.bf16.mxu1 %v1474_v46  ;;  %v1467_v46 = vunpack.c.h.s8.bf16 %v1411_v36 }
 0x3b4   :  { %1512 = vmatpush1.bf16.msra.mxu1 %v1473_v60  ;;  %v1415_v60 = vld [vmem:[#allocation19 + $0xd0] sm:$0xff] }
 0x3b5   :  { %1513 = vmatprep.subr.bf16.mxu1 %v1478_v10  ;;  %v1667_v10 = vunpack.c.l.s8.bf16 %v1631_v53 }
 0x3b7   :  { %1732 = vmatpush1.bf16.msra.mxu0 %v1667_v10 }
 0x3b8   :  { %1514 = vmatpush1.bf16.msra.mxu1 %v1477_v62  ;;  %v1634_v62 = vld [vmem:[#allocation22 + $0x38] sm:$0xff]  ;;  %1733 = vmatprep.subr.bf16.mxu0 %v1670_v61  ;;  %v1842_v61 = vld [vmem:[%s3011_s18 + $0x28] sm:$0xff] }
 0x3b9   :  { %1515 = vmatprep.subr.bf16.mxu1 %v1482_v27  ;;  %v1471_v27 = vunpack.c.l.s8.bf16 %v1415_v60  ;;  %v1672_v63 = vunpack.c.l.s8.bf16 %v1634_v62  ;;  %v1674_v54 = vunpack.c.h.s8.bf16 %v1634_v62 }
 0x3bc   :  { %1516 = vmatpush1.bf16.msra.mxu1 %v1481_v50  ;;  %v1669_v50 = vunpack.c.h.s8.bf16 %v1631_v53  ;;  %v1841_v53 = vld [vmem:[%s3011_s18 + $0x20] sm:$0xff] }
 0x3bd   :  { %1526 = vmatprep.subr.bf16.mxu1 %v1424_v32  ;;  %v1420_v32 = vld [vmem:[#allocation19 + $0xf8] sm:$0xff]  ;;  %v1854_v10 = vunpack.c.h.s8.bf16 %v1841_v53 }
 0x3be   :  { %v1480_v2 = vunpack.c.l.s8.bf16 %v1420_v32  ;;  %1734 = vmatpush1.bf16.msra.mxu0 %v1669_v50  ;;  %v1484_v33 = vunpack.c.h.s8.bf16 %v1420_v32  ;;  %v1856_v32 = vunpack.c.h.s8.bf16 %v1842_v61 }
 0x3bf   :  { %1518 = vmatmul.mubr.bf16.vlgmr.msra.gmra.mrb[16].mxu1 %v2914_v47  ;;  %1735 = vmatprep.subr.bf16.mxu0 %v1672_v63  ;;  %v1843_v63 = vld [vmem:[%s3011_s18 + $0x30] sm:$0xff] }
 0x3c0   :  { %1527 = vmatpush1.bf16.msra.mxu1 %v1423_v0  ;;  %1558 = vmatprep.mubr.bf16.mxu1 %v2909_v7  ;;  %v1443_v7 = vunpack.c.h.s8.bf16 %v1399_v6  ;;  %v1633_v0 = vld [vmem:[#allocation22 + $0x30] sm:$0xff]  ;;  %v1635_v6 = vld [vmem:[#allocation22 + $0x40] sm:$0xff] }
 0x3c1   :  { %1528 = vmatprep.subr.bf16.mxu1 %v1428_v1  ;;  %v1475_v1 = vunpack.c.h.s8.bf16 %v1415_v60 }
 0x3c4   :  { %1529 = vmatpush1.bf16.msra.mxu1 %v1427_v3  ;;  %v1419_v3 = vld [vmem:[#allocation19 + $0xf0] sm:$0xff] }
 0x3c5   :  { %1530 = vmatprep.subr.bf16.mxu1 %v1432_v31  ;;  %v1671_v31 = vunpack.c.l.s8.bf16 %v1633_v0 }
 0x3c7   :  { %1736 = vmatpush1.bf16.msra.mxu0 %v1671_v31  ;;  %v1858_v31 = vunpack.c.h.s8.bf16 %v1843_v63 }
 0x3c8   :  { %1531 = vmatpush1.bf16.msra.mxu1 %v1431_v4  ;;  %v1636_v4 = vld [vmem:[#allocation22 + $0x48] sm:$0xff]  ;;  %1737 = vmatprep.subr.bf16.mxu0 %v1674_v54  ;;  %v2949_v54 = vld [vmem:[%s3006_s13] sm:$0xf] }
 0x3c9   :  { %1532 = vmatprep.subr.bf16.mxu1 %v1436_v5  ;;  %v1479_v5 = vunpack.c.l.s8.bf16 %v1419_v3  ;;  %v1678_v11 = vunpack.c.h.s8.bf16 %v1636_v4 }
 0x3cc   :  { %1533 = vmatpush1.bf16.msra.mxu1 %v1435_v39  ;;  %v1673_v39 = vunpack.c.h.s8.bf16 %v1633_v0 }
 0x3cd   :  { %1534 = vmatprep.subr.bf16.mxu1 %v1440_v56  ;;  %v1676_v56 = vunpack.c.l.s8.bf16 %v1636_v4  ;;  %v2951_v4 = vld [vmem:[#allocation20] sm:$0xf] }
 0x3ce   :  { %1738 = vmatpush1.bf16.msra.mxu0 %v1673_v39  ;;  %v1598_v39 = vrot.slane %v2951_v4, %v2843_v52 }
 0x3cf   :  { %1739 = vmatprep.subr.bf16.mxu0 %v1676_v56 }
 0x3d0   :  { %1535 = vmatpush1.bf16.msra.mxu1 %v1439_v8  ;;  %v1483_v8 = vunpack.c.h.s8.bf16 %v1419_v3 }
 0x3d1   :  { %1536 = vmatprep.subr.bf16.mxu1 %v1444_v9  ;;  %v1675_v9 = vunpack.c.l.s8.bf16 %v1635_v6 }
 0x3d3   :  { %1740 = vmatpush1.bf16.msra.mxu0 %v1675_v9 }
 0x3d4   :  { %1537 = vmatpush1.bf16.msra.mxu1 %v1443_v7  ;;  %v1638_v7 = vld [vmem:[#allocation22 + $0x58] sm:$0xff]  ;;  %1741 = vmatprep.subr.bf16.mxu0 %v1678_v11 }
 0x3d5   :  { %1538 = vmatprep.subr.bf16.mxu1 %v1448_v12  ;;  %v1677_v12 = vunpack.c.h.s8.bf16 %v1635_v6  ;;  %v1680_v13 = vunpack.c.l.s8.bf16 %v1638_v7  ;;  %v1682_v16 = vunpack.c.h.s8.bf16 %v1638_v7  ;;  %v1602_v6 = vrot.slane %v2951_v4, %v2851_v57 }
 0x3d7   :  { %1742 = vmatpush1.bf16.msra.mxu0 %v1677_v12 }
 0x3d8   :  { %1539 = vmatpush1.bf16.msra.mxu1 %v1447_v14  ;;  %v1637_v14 = vld [vmem:[#allocation22 + $0x50] sm:$0xff]  ;;  %1743 = vmatprep.subr.bf16.mxu0 %v1680_v13 }
 0x3d9   :  { %1540 = vmatprep.subr.bf16.mxu1 %v1452_v15  ;;  %v1679_v15 = vunpack.c.l.s8.bf16 %v1637_v14  ;;  %v1681_v23 = vunpack.c.h.s8.bf16 %v1637_v14 }
 0x3db   :  { %1744 = vmatpush1.bf16.msra.mxu0 %v1679_v15 }
 0x3dc   :  { %1541 = vmatpush1.bf16.msra.mxu1 %v1451_v30  ;;  %1745 = vmatprep.subr.bf16.mxu0 %v1682_v16  ;;  %v1683_v30 = vunpack.c.l.s8.bf16 %v1639_v19  ;;  %v1643_v16 = vld [vmem:[#allocation22 + $0x80] sm:$0xff] }
 0x3dd   :  { %1542 = vmatprep.subr.bf16.mxu1 %v1456_v20  ;;  %v1686_v20 = vunpack.c.h.s8.bf16 %v1640_v17 }
 0x3df   :  { %1746 = vmatpush1.bf16.msra.mxu0 %v1681_v23 }
 0x3e0   :  { %1543 = vmatpush1.bf16.msra.mxu1 %v1455_v22  ;;  %1747 = vmatprep.subr.bf16.mxu0 %v1684_v18  ;;  %v1642_v22 = vld [vmem:[#allocation22 + $0x78] sm:$0xff]  ;;  %v1691_v18 = vunpack.c.l.s8.bf16 %v1643_v16 }
 0x3e1   :  { %1544 = vmatprep.subr.bf16.mxu1 %v1460_v24  ;;  %v1641_v24 = vld [vmem:[#allocation22 + $0x70] sm:$0xff]  ;;  %v1690_v26 = vunpack.c.h.s8.bf16 %v1642_v22 }
 0x3e2   :  { %v1687_v25 = vunpack.c.l.s8.bf16 %v1641_v24  ;;  %v1689_v28 = vunpack.c.h.s8.bf16 %v1641_v24 }
 0x3e3   :  { %1748 = vmatpush1.bf16.msra.mxu0 %v1683_v30  ;;  %v1694_v30 = vunpack.c.h.s8.bf16 %v2919_v48 }
 0x3e4   :  { %1545 = vmatpush1.bf16.msra.mxu1 %v1459_v34  ;;  %1749 = vmatprep.subr.bf16.mxu0 %v1686_v20  ;;  %v1646_v20 = vld [vmem:[#allocation22 + $0x98] sm:$0xff] }
 0x3e5   :  { %1546 = vmatprep.subr.bf16.mxu1 %v1464_v35  ;;  %v1971_v35 = vld [vmem:[#allocation16] ss:$0 sm:$0xff] }
 0x3e7   :  { %1750 = vmatpush1.bf16.msra.mxu0 %v1685_v21  ;;  %v1693_v21 = vunpack.c.h.s8.bf16 %v1643_v16 }
 0x3e8   :  { %1547 = vmatpush1.bf16.msra.mxu1 %v1463_v44 }
 0x3e9   :  { %1548 = vmatprep.subr.bf16.mxu1 %v1468_v40 }
 0x3ec   :  { %1549 = vmatpush1.bf16.msra.mxu1 %v1467_v46  ;;  %v1837_v46 = vld [vmem:[%s3011_s18] sm:$0xff] }
 0x3ed   :  { %1550 = vmatprep.subr.bf16.mxu1 %v1472_v51  ;;  %v1853_v51 = vunpack.c.l.s8.bf16 %v1841_v53  ;;  %v1845_v60 = vunpack.c.l.s8.bf16 %v1837_v46  ;;  %v1846_v62 = vunpack.c.h.s8.bf16 %v1837_v46 }
 0x3f0   :  { %1551 = vmatpush1.bf16.msra.mxu1 %v1471_v27  ;;  %v1855_v27 = vunpack.c.l.s8.bf16 %v1842_v61  ;;  %v1653_v61 = vld [vmem:[#allocation22 + $0xd0] sm:$0xff] }
 0x3f1   :  { %1552 = vmatprep.subr.bf16.mxu1 %v1476_v49  ;;  %v1838_v49 = vld [vmem:[%s3011_s18 + $0x8] sm:$0xff] }
 0x3f2   :  { %v1847_v50 = vunpack.c.l.s8.bf16 %v1838_v49  ;;  %v1848_v0 = vunpack.c.h.s8.bf16 %v1838_v49  ;;  %v1656_v49 = vld [vmem:[#allocation22 + $0xe8] sm:$0xff] }
 0x3f4   :  { %1553 = vmatpush1.bf16.msra.mxu1 %v1475_v1  ;;  %v1857_v1 = vunpack.c.l.s8.bf16 %v1843_v63  ;;  %v1655_v63 = vld [vmem:[#allocation22 + $0xe0] sm:$0xff] }
 0x3f5   :  { %1554 = vmatprep.subr.bf16.mxu1 %v1480_v2  ;;  %v2943_v2 = vld [vmem:[%s3011_s18 + $0x10] sm:$0xff] }
 0x3f6   :  { %v1849_v3 = vunpack.c.l.s8.bf16 %v2943_v2 }
 0x3f8   :  { %1555 = vmatpush1.bf16.msra.mxu1 %v1479_v5  ;;  %v1572_v5 = vrot.slane %v2949_v54, %v2843_v52 }
 0x3f9   :  { %1556 = vmatprep.subr.bf16.mxu1 %v1484_v33  ;;  %v1576_v33 = vrot.slane %v2949_v54, %v2851_v57 }
 0x3fc   :  { %1557 = vmatpush1.bf16.msra.mxu1 %v1483_v8 }
 0x3fd   :  { %2005 = vmatprep.subr.bf16.mxu1 %v1853_v51  ;;  %v1654_v51 = vld [vmem:[#allocation22 + $0xd8] sm:$0xff] }
 0x3ff   :  { %1559 = vmatmul.mubr.bf16.vlgmr.msra.gmra.mrb[20].mxu1 %v2914_v47  ;;  %v1688_v47 = vunpack.c.l.s8.bf16 %v1642_v22  ;;  %v1696_v22 = vunpack.c.l.s8.bf16 %v1646_v20 }
 0x400   :  { %2006 = vmatpush3.bf16.msra.mxu1 %v1845_v60 }
 0x401   :  { %1751 = vmatprep.subr.bf16.mxu0 %v1688_v47  ;;  %2007 = vmatprep.subr.bf16.mxu1 %v1854_v10  ;;  %v1645_v47 = vld [vmem:[#allocation22 + $0x90] sm:$0xff]  ;;  %v1712_v10 = vunpack.c.l.s8.bf16 %v1654_v51 }
 0x402   :  { %1752 = vmatpush1.bf16.msra.mxu0 %v1687_v25  ;;  %v1695_v24 = vunpack.c.l.s8.bf16 %v1645_v47  ;;  %v1698_v25 = vunpack.c.h.s8.bf16 %v1646_v20 }
 0x403   :  { %1753 = vmatprep.subr.bf16.mxu0 %v1690_v26  ;;  %v1648_v26 = vld [vmem:[#allocation22 + $0xa8] sm:$0xff] }
 0x404   :  { %2008 = vmatpush3.bf16.msra.mxu1 %v1846_v62  ;;  %v1711_v62 = vunpack.c.l.s8.bf16 %v1653_v61 }
 0x405   :  { %2009 = vmatprep.subr.bf16.mxu1 %v1855_v27  ;;  %v1714_v27 = vunpack.c.h.s8.bf16 %v1654_v51 }
 0x406   :  { %1754 = vmatpush1.bf16.msra.mxu0 %v1689_v28  ;;  %v1697_v28 = vunpack.c.h.s8.bf16 %v1645_v47 }
 0x407   :  { %1764 = vmatprep.subr.bf16.mxu0 %v1692_v29  ;;  %v1700_v29 = vunpack.c.l.s8.bf16 %v1648_v26 }
 0x408   :  { %2010 = vmatpush3.bf16.msra.mxu1 %v1847_v50  ;;  %v1713_v50 = vunpack.c.h.s8.bf16 %v1653_v61 }
 0x409   :  { %2011 = vmatprep.subr.bf16.mxu1 %v1856_v32  ;;  %v1716_v32 = vunpack.c.l.s8.bf16 %v1656_v49 }
 0x40c   :  { %2012 = vmatpush3.bf16.msra.mxu1 %v1848_v0  ;;  %v1715_v0 = vunpack.c.l.s8.bf16 %v1655_v63 }
 0x40d   :  { %2013 = vmatprep.subr.bf16.mxu1 %v1857_v1  ;;  %v1718_v1 = vunpack.c.h.s8.bf16 %v1656_v49 }
 0x410   :  { %2014 = vmatpush3.bf16.msra.mxu1 %v1849_v3  ;;  %v1658_v3 = vld [vmem:[#allocation22 + $0xf8] sm:$0xff] }
 0x411   :  { %2015 = vmatprep.subr.bf16.mxu1 %v1858_v31  ;;  %v1717_v31 = vunpack.c.h.s8.bf16 %v1655_v63  ;;  %v1981_v63 = vld [vmem:[#allocation2] ss:$0 sm:$0xff] }
 0x452   :  { %v1999_v55 = vpop.f32.mrb[12].mxu1 }
 0x453   :  { %v2000_v34 = vpop.f32.mrb[13].mxu1 }
 0x454   :  { %v2001_v36 = vadd.f32 %v2000_v34, %v1999_v55  ;;  %v2002_v37 = vpop.f32.mrb[14].mxu1  ;;  %v1647_v55 = vld [vmem:[#allocation22 + $0xa0] sm:$0xff]  ;;  %v1702_v34 = vunpack.c.h.s8.bf16 %v1648_v26 }
 0x455   :  { %v2003_v38 = vpop.f32.mrb[15].mxu1  ;;  %v1699_v48 = vunpack.c.l.s8.bf16 %v1647_v55  ;;  %v1819_v26 = vld [vmem:[#allocation25] sm:$0x3] }
 0x456   :  { %v1330_v44 = vmul.f32 %v2001_v36, %v1971_v35  ;;  %v1650_v35 = vld [vmem:[#allocation22 + $0xb8] sm:$0xff]  ;;  %v1701_v36 = vunpack.c.h.s8.bf16 %v1647_v55  ;;  %v1649_v38 = vld [vmem:[#allocation22 + $0xb0] sm:$0xff] }
 0x457   :  { %v1704_v37 = vunpack.c.l.s8.bf16 %v1650_v35 }
 0x458   :  { %v1338_v40 = vadd.f32 %v1972_v41, %v1330_v44  ;;  %v1703_v41 = vunpack.c.l.s8.bf16 %v1649_v38  ;;  %v1706_v44 = vunpack.c.h.s8.bf16 %v1650_v35 }
 0x45a   :  { %v1339_v42 = vmax.f32 %v1338_v40, 0.0  ;;  %v1652_v40 = vld [vmem:[#allocation22 + $0xc8] sm:$0xff] }
 0x45b   :  { %v1710_v46 = vunpack.c.h.s8.bf16 %v1652_v40 }
 0x45c   :  { %v1925_v43 = vmul.f32 %v1979_v45, %v1339_v42  ;;  %v1705_v45 = vunpack.c.h.s8.bf16 %v1649_v38  ;;  %v1708_v42 = vunpack.c.l.s8.bf16 %v1652_v40 }
 0x45e   :  { %1926 = vadd.xlane.f32.xlu1 %v1925_v43  ;;  %v1651_v43 = vld [vmem:[#allocation22 + $0xc0] sm:$0xff] }
 0x45f   :  { %v1707_v53 = vunpack.c.l.s8.bf16 %v1651_v43  ;;  %v1709_v60 = vunpack.c.h.s8.bf16 %v1651_v43 }
 0x492   :  { %v1519_v56 = vpop.f32.mrb[16].mxu1 }
 0x493   :  { %v1589_v8 = vmul.f32 %v1572_v5, %v1519_v56  ;;  %v1521_v9 = vpop.f32.mrb[17].mxu1  ;;  %v1580_v5 = vrot.slane %v2949_v54, %v2873_v58  ;;  %v1584_v56 = vrot.slane %v2949_v54, %v2854_v59 }
 0x494   :  { %v1590_v11 = vmul.f32 %v1576_v33, %v1521_v9  ;;  %v1523_v7 = vpop.f32.mrb[18].mxu1  ;;  %v1720_v33 = vunpack.c.l.s8.bf16 %v1658_v3  ;;  %v1610_v9 = vrot.slane %v2951_v4, %v2854_v59  ;;  %v1850_v59 = vunpack.c.h.s8.bf16 %v2943_v2 }
 0x495   :  { %v1615_v12 = vadd.f32 %v1598_v39, %v1589_v8  ;;  %v1524_v13 = vpop.f32.mrb[19].mxu1  ;;  %v1657_v39 = vld [vmem:[#allocation22 + $0xf0] sm:$0xff] }
 0x496   :  { %v1616_v14 = vadd.f32 %v1602_v6, %v1590_v11  ;;  %v1606_v6 = vrot.slane %v2951_v4, %v2873_v58  ;;  %v1719_v11 = vunpack.c.l.s8.bf16 %v1657_v39  ;;  %v1722_v13 = vunpack.c.h.s8.bf16 %v1658_v3  ;;  %2016 = vmatpush3.bf16.msra.mxu1 %v1850_v59  ;;  %v1844_v4 = vld [vmem:[%s3011_s18 + $0x38] sm:$0xff] }
 0x497   :  { %v1619_v15 = vmax.f32 %v1615_v12, 0.0  ;;  %v1721_v54 = vunpack.c.h.s8.bf16 %v1657_v39  ;;  %v1859_v20 = vunpack.c.l.s8.bf16 %v1844_v4  ;;  %v1860_v47 = vunpack.c.h.s8.bf16 %v1844_v4 }
 0x498   :  { %v1620_v17 = vmax.f32 %v1616_v14, 0.0 }
 0x499   :  { %v1623_v19 = vpack.c.bf16 %v1619_v15, %v1619_v15  ;;  %2017 = vmatprep.subr.bf16.mxu1 %v1859_v20 }
 0x49a   :  { %v1624_v23 = vpack.c.bf16 %v1620_v17, %v1620_v17 }
 0x49c   :  { %1755 = vmatprep.mubr.bf16.mxu0 %v1624_v23 }
 0x49d   :  { %1756 = vmatmul.mubr.bf16.vlgmr.msra.gmra.mrb[16].mxu0 %v1623_v19 }
 0x49e   :  { %1765 = vmatpush1.bf16.msra.mxu0 %v1691_v18 }
 0x49f   :  { %1766 = vmatprep.subr.bf16.mxu0 %v1694_v30 }
 0x4a2   :  { %1767 = vmatpush1.bf16.msra.mxu0 %v1693_v21  ;;  %v1840_v21 = vld [vmem:[%s3011_s18 + $0x18] sm:$0xff] }
 0x4a3   :  { %1768 = vmatprep.subr.bf16.mxu0 %v1696_v22  ;;  %v1851_v22 = vunpack.c.l.s8.bf16 %v1840_v21 }
 0x4a5   :  { %2018 = vmatpush3.bf16.msra.mxu1 %v1851_v22 }
 0x4a6   :  { %1769 = vmatpush1.bf16.msra.mxu0 %v1695_v24  ;;  %v1852_v24 = vunpack.c.h.s8.bf16 %v1840_v21  ;;  %2019 = vmatprep.subr.bf16.mxu1 %v1860_v47 }
 0x4a7   :  { %1770 = vmatprep.subr.bf16.mxu0 %v1698_v25  ;;  %v1805_v25 = vld [vmem:[#allocation23] sm:$0x3] }
 0x4a8   :  { %v1810_v2 = vrot.slane %v1805_v25, %v2843_v52 }
 0x4a9   :  { %2020 = vmatpush3.bf16.msra.mxu1 %v1852_v24 }
 0x4aa   :  { %1771 = vmatpush1.bf16.msra.mxu0 %v1697_v28  ;;  %v1814_v28 = vrot.slane %v1805_v25, %v2851_v57 }
 0x4ab   :  { %1772 = vmatprep.subr.bf16.mxu0 %v1700_v29  ;;  %v1824_v29 = vrot.slane %v1819_v26, %v2843_v52  ;;  %v1977_v52 = vld [vmem:[%s3012_s19] ss:$0 sm:$0xff] }
 0x4ae   :  { %1773 = vmatpush1.bf16.msra.mxu0 %v1699_v48  ;;  %v1828_v48 = vrot.slane %v1819_v26, %v2851_v57 }
 0x4af   :  { %1774 = vmatprep.subr.bf16.mxu0 %v1702_v34 }
 0x4b2   :  { %1775 = vmatpush1.bf16.msra.mxu0 %v1701_v36 }
 0x4b3   :  { %1776 = vmatprep.subr.bf16.mxu0 %v1704_v37 }
 0x4b6   :  { %1777 = vmatpush1.bf16.msra.mxu0 %v1703_v41 }
 0x4b7   :  { %1778 = vmatprep.subr.bf16.mxu0 %v1706_v44 }
 0x4ba   :  { %1779 = vmatpush1.bf16.msra.mxu0 %v1705_v45 }
 0x4bb   :  { %1780 = vmatprep.subr.bf16.mxu0 %v1708_v42 }
 0x4be   :  { %1781 = vmatpush1.bf16.msra.mxu0 %v1707_v53 }
 0x4bf   :  { %1782 = vmatprep.subr.bf16.mxu0 %v1710_v46 }
 0x4c2   :  { %1783 = vmatpush1.bf16.msra.mxu0 %v1709_v60 }
 0x4c3   :  { %1784 = vmatprep.subr.bf16.mxu0 %v1712_v10  ;;  %v1978_v10 = vld [vmem:[%s3013_s20] ss:$0 sm:$0xff] }
 0x4c6   :  { %1785 = vmatpush1.bf16.msra.mxu0 %v1711_v62 }
 0x4c7   :  { %1786 = vmatprep.subr.bf16.mxu0 %v1714_v27  ;;  %v1980_v27 = vld [vmem:[%s3046_s30] ss:$0 sm:$0xff] }
 0x4ca   :  { %1787 = vmatpush1.bf16.msra.mxu0 %v1713_v50 }
 0x4cb   :  { %1788 = vmatprep.subr.bf16.mxu0 %v1716_v32 }
 0x4ce   :  { %1789 = vmatpush1.bf16.msra.mxu0 %v1715_v0 }
 0x4cf   :  { %1790 = vmatprep.subr.bf16.mxu0 %v1718_v1 }
 0x4d2   :  { %v1560_v8 = vpop.f32.mrb[20].mxu1  ;;  %1791 = vmatpush1.bf16.msra.mxu0 %v1717_v31 }
 0x4d3   :  { %v1591_v7 = vmul.f32 %v1580_v5, %v1560_v8  ;;  %v1562_v12 = vpop.f32.mrb[21].mxu1  ;;  %1792 = vmatprep.subr.bf16.mxu0 %v1720_v33 }
 0x4d4   :  { %v1592_v14 = vmul.f32 %v1584_v56, %v1562_v12  ;;  %v1564_v15 = vpop.f32.mrb[22].mxu1 }
 0x4d5   :  { %v1617_v16 = vadd.f32 %v1606_v6, %v1591_v7  ;;  %v1565_v17 = vpop.f32.mrb[23].mxu1 }
 0x4d6   :  { %v1618_v23 = vadd.f32 %v1610_v9, %v1592_v14  ;;  %1793 = vmatpush1.bf16.msra.mxu0 %v1719_v11 }
 0x4d7   :  { %v1621_v18 = vmax.f32 %v1617_v16, 0.0  ;;  %1794 = vmatprep.subr.bf16.mxu0 %v1722_v13 }
 0x4d8   :  { %v1622_v58 = vmax.f32 %v1618_v23, 0.0 }
 0x4d9   :  { %v1625_v30 = vpack.c.bf16 %v1621_v18, %v1621_v18 }
 0x4da   :  { %v1626_v19 = vpack.c.bf16 %v1622_v58, %v1622_v58  ;;  %1795 = vmatpush1.bf16.msra.mxu0 %v1721_v54 }
 0x4dc   :  { %1796 = vmatprep.mubr.bf16.mxu0 %v1626_v19 }
 0x4dd   :  { %1797 = vmatmul.mubr.bf16.vlgmr.msra.gmra.mrb[16].mxu0 %v1625_v30 }
 0x4eb   :  { %v1927_v32 = vpop.xlane.xlu1 %1926 }
 0x5b0   :  { %v1798_v55 = vpop.f32.mrb[16].mxu0 }
 0x5b1   :  { %v1817_v34 = vmul.f32 %v1810_v2, %v1798_v55  ;;  %v1800_v35 = vpop.f32.mrb[17].mxu0 }
 0x5b2   :  { %v1818_v36 = vmul.f32 %v1814_v28, %v1800_v35  ;;  %v1802_v37 = vpop.f32.mrb[18].mxu0 }
 0x5b3   :  { %v1831_v38 = vadd.f32 %v1824_v29, %v1817_v34  ;;  %v1803_v41 = vpop.f32.mrb[19].mxu0 }
 0x5b4   :  { %v1832_v44 = vadd.f32 %v1828_v48, %v1818_v36 }
 0x5b5   :  { %v1833_v40 = vmax.f32 %v1831_v38, 0.0 }
 0x5b6   :  { %v1834_v45 = vmax.f32 %v1832_v44, 0.0 }
 0x5b7   :  { %v1835_v43 = vpack.c.bf16 %v1833_v40, %v1833_v40 }
 0x5b8   :  { %v1836_v42 = vpack.c.bf16 %v1834_v45, %v1834_v45 }
 0x5ba   :  { %1893 = vmatprep.mubr.bf16.mxu1 %v1836_v42 }
 0x5bb   :  { %1894 = vmatmul.mubr.bf16.vlgmr.msra.gmra.mrb[24].mxu1 %v1835_v43 }
 0x68e   :  { %v2021_v53 = vpop.f32.mrb[24].mxu1 }
 0x68f   :  { %v2022_v46 = vpop.f32.mrb[25].mxu1 }
 0x690   :  { %v2023_v57 = vadd.f32 %v2022_v46, %v2021_v53  ;;  %v2024_v51 = vpop.f32.mrb[26].mxu1 }
 0x691   :  { %v2025_v60 = vpop.f32.mrb[27].mxu1 }
 0x692   :  { %v1908_v61 = vmul.f32 %v2023_v57, %v1977_v52 }
 0x694   :  { %v1916_v62 = vadd.f32 %v1978_v10, %v1908_v61 }
 0x696   :  { %v1917_v49 = vmax.f32 %v1916_v62, 0.0 }
 0x698   :  { %v1935_v50 = vmul.f32 %v1980_v27, %v1917_v49 }
 0x69a   :  { %1936 = vadd.xlane.f32.xlu0 %v1935_v50 }
 0x727   :  { %v1937_v0 = vpop.xlane.xlu0 %1936 }
 0x728   :  { %v1938_v1 = vadd.f32 %v1937_v0, %v1927_v32 }
 0x72a   :  { %v1946_v3 = vadd.f32 %v1981_v63, %v1938_v1 }
 0x72c   :  { %v1982_v31 = vmul.f32 -1.442695, %v1946_v3 }
 0x72e   :  { %2067 = vpow2.f32 %v1982_v31 }
 0x738   :  { %v2068_v5 = vpop.eup %2067 }
 0x739   :  { %v1950_v33 = vadd.f32 1.0, %v2068_v5 }
 0x73b   :  { %2069 = vrcp.f32 %v1950_v33 }
 0x745   :  { %v2070_v39 = vpop.eup %2069 }
 0x746   :  { %1955 = vperm.xlu0 %2060, %v2070_v39  }
 0x7c5   :  { %v1956_v56 = vpop.permute.xlu0 %1955 }
 0x7c6   :  { %1958 = vst [vmem:[%s3047_s25] sm:$0xff] %v1956_v56 }
 0x7c7   :  { %1963 = vsyncpa [#allocation4], 1 }
 0x7c8   :  { %1964 = vsyncpa [#allocation6], 1 }
 0x7c9   :  { %1965 = vsyncpa [#allocation9], 1 }
 0x7ca   :  { %1966 = vsyncpa [#allocation12], 1 }
 0x7cb   :  { %1967 = vsyncpa [#allocation15], 1 }
 0x7cc   :  { %1968 = vsyncpa [#allocation18], 1 }
 0x7cd   :  { %1969 = vsyncpa [#allocation21], 1 }
 0x7ce   :  { %1970 = vsyncpa [#allocation24], 1 }

</bundles_post_ra>
